<compile_context>
chip_gen: v6e
topology: v6e:2x2x1
jax: 0.10.0
libtpu: 0.0.40
codegen_flags: <defaults>
</compile_context>

<pallas_src>
import functools
import math

import jax
import jax.numpy as jnp
from jax import lax
from jax.experimental import pallas as pl
from jax.experimental.pallas import tpu as pltpu

EMBED = 64
NUM_HEADS = 4
HEAD_SIZE = EMBED // NUM_HEADS
LN_EPS = 1e-5


def _layer_norm(x, gamma, beta):
    # PyTorch LayerNorm: biased variance, eps inside sqrt.
    mean = jnp.mean(x, axis=-1, keepdims=True)
    var = jnp.mean((x - mean) ** 2, axis=-1, keepdims=True)
    return (x - mean) * lax.rsqrt(var + LN_EPS) * gamma + beta


def transformer_block_kernel(
    x_ref,
    ln1g_ref, ln1b_ref,
    wqkv_ref,
    wp_ref, bp_ref,
    ln2g_ref, ln2b_ref,
    w1_ref, b1_ref, w2_ref, b2_ref,
    o_ref,
    qkv_ref, x1_ref, ocat_ref,
    *, seq_len, block_batch, num_heads, head_size,
):
    S, H, hd = seq_len, num_heads, head_size
    E = H * hd
    bf16 = jnp.bfloat16

    x = x_ref[...]                                              # (M, E) f32
    xn = _layer_norm(x, ln1g_ref[...], ln1b_ref[...])

    # Fused QKV projection: one (M, E) x (E, 3E) bf16 matmul, f32 accumulate,
    # result kept in a bf16 VMEM scratch (MXU-native operands, half traffic).
    qkv_ref[...] = jnp.dot(xn.astype(bf16), wqkv_ref[...],
                           preferred_element_type=jnp.float32).astype(bf16)

    # Causal mask, shared by every (batch, head).
    row = lax.broadcasted_iota(jnp.int32, (S, S), 0)
    col = lax.broadcasted_iota(jnp.int32, (S, S), 1)
    causal = row >= col
    neg_big = jnp.float32(-1e30)    # finite: every row has >=1 unmasked entry

    wp = wp_ref[...]                # (E, E) bf16
    bp = bp_ref[...]                # (1, E) f32
    align = 8 if S % 8 == 0 else 1

    @pl.loop(0, block_batch)        # batch loop: scf.for, bounded live ranges
    def _attention(bi):
        r0 = bi * S
        if align > 1:
            r0 = pl.multiple_of(r0, align)
        rows = pl.ds(r0, S)
        for h in range(H):          # H = 4: keep unrolled
            q_h = qkv_ref[rows, h * hd:(h + 1) * hd]                 # (S, hd) bf16
            k_h = qkv_ref[rows, E + h * hd:E + (h + 1) * hd]
            v_h = qkv_ref[rows, 2 * E + h * hd:2 * E + (h + 1) * hd]
            # q @ k^T via contraction of the last dims (no explicit transpose).
            s = lax.dot_general(q_h, k_h, (((1,), (1,)), ((), ())),
                                preferred_element_type=jnp.float32)  # (S, S) f32
            s = jnp.where(causal, s, neg_big)
            m = jnp.max(s, axis=-1, keepdims=True)
            p = jnp.exp(s - m)                                       # f32 exp (EUP)
            denom = jnp.sum(p, axis=-1, keepdims=True)               # (S, 1)
            o_un = jnp.dot(p.astype(bf16), v_h,
                           preferred_element_type=jnp.float32)       # (S, hd)
            # Normalize after P@V; park head output at its lane offset so the
            # projection below is a single K=64 matmul.
            ocat_ref[:, h * hd:(h + 1) * hd] = (
                o_un * pl.reciprocal(denom, approx=True)).astype(bf16)
        # Single (S,64) x (64,E) output projection for all heads of this batch.
        sa_b = jnp.dot(ocat_ref[...], wp, preferred_element_type=jnp.float32)
        x1_ref[rows, :] = x_ref[rows, :] + sa_b + bp                 # residual 1

    # LayerNorm 2 + feed-forward (ReLU) + residual 2 on the full slab.
    x1 = x1_ref[...]
    x1n = _layer_norm(x1, ln2g_ref[...], ln2b_ref[...])
    h1 = jnp.dot(x1n.astype(bf16), w1_ref[...],
                 preferred_element_type=jnp.float32) + b1_ref[...]
    h1 = jnp.maximum(h1, 0.0)
    ff = jnp.dot(h1.astype(bf16), w2_ref[...],
                 preferred_element_type=jnp.float32) + b2_ref[...]
    o_ref[...] = (x1 + ff).astype(o_ref.dtype)


def prepare_params(params):
    """One-time weight prep: fuse QKV (Q pre-scaled by E**-0.5), cast GEMM
    weights to bf16, and lift 1-D params to (1, D) f32 arrays."""
    E = params["wq"].shape[0]
    scale = jnp.float32(E ** -0.5)
    row = lambda v: v.reshape(1, -1).astype(jnp.float32)
    bf = lambda w: w.astype(jnp.bfloat16)
    wqkv = jnp.concatenate(
        [params["wq"] * scale, params["wk"], params["wv"]], axis=1)   # (E, 3E)
    return {
        "ln1_g": row(params["ln1_g"]), "ln1_b": row(params["ln1_b"]),
        "wqkv": bf(wqkv),
        "wp": bf(params["wp"]), "bp": row(params["bp"]),
        "ln2_g": row(params["ln2_g"]), "ln2_b": row(params["ln2_b"]),
        "w1": bf(params["w1"]), "b1": row(params["b1"]),
        "w2": bf(params["w2"]), "b2": row(params["b2"]),
    }


def _pick_block_batch(B, S, target_rows=2048, min_grid=2):
    """Largest divisor Bt of B with Bt*S <= target_rows, preferring >= min_grid
    grid steps (keeps both v7x TensorCores busy).  On v5e min_grid=1 is
    reasonable when the whole problem fits VMEM (single TC)."""
    divs = [d for d in range(1, B + 1) if B % d == 0]
    cands = [d for d in divs if B // d >= min_grid] or divs
    fitting = [d for d in cands if d * S <= max(target_rows, S)]
    return max(fitting) if fitting else min(cands)


def transformer_block(x, prepared, *, block_batch=None):
    B, S, E = x.shape
    assert E == EMBED
    Bt = block_batch if block_batch is not None else _pick_block_batch(B, S)
    assert B % Bt == 0
    M = Bt * S

    weight_order = ["ln1_g", "ln1_b", "wqkv", "wp", "bp",
                    "ln2_g", "ln2_b", "w1", "b1", "w2", "b2"]
    weights = [prepared[n] for n in weight_order]

    def full_spec(a):
        nd = a.ndim
        return pl.BlockSpec(a.shape, lambda i, _nd=nd: (0,) * _nd)

    in_specs = [pl.BlockSpec((M, E), lambda i: (i, 0))]
    in_specs += [full_spec(w) for w in weights]

    kernel = functools.partial(
        transformer_block_kernel,
        seq_len=S, block_batch=Bt, num_heads=NUM_HEADS, head_size=HEAD_SIZE)

    x2 = x.reshape(B * S, E)   # free view: fold batch into the GEMM M dim
    out2 = pl.pallas_call(
        kernel,
        out_shape=jax.ShapeDtypeStruct((B * S, E), x.dtype),
        grid_spec=pltpu.PrefetchScalarGridSpec(
            num_scalar_prefetch=0,
            grid=(B // Bt,),
            in_specs=in_specs,
            out_specs=pl.BlockSpec((M, E), lambda i: (i, 0)),
            scratch_shapes=[
                pltpu.VMEM((M, 3 * E), jnp.bfloat16),   # fused QKV activations
                pltpu.VMEM((M, E), jnp.float32),        # residual-1 slab (x1)
                pltpu.VMEM((S, E), jnp.bfloat16),       # per-batch head-output concat
            ],
        ),
        compiler_params=pltpu.CompilerParams(
            dimension_semantics=("parallel",),
            # ~10 MiB needed at 2048-row slabs; 32 MiB gives headroom, lifts
            # v5e's 16 MiB default, and stays under v7x's 64 MiB physical VMEM.
            vmem_limit_bytes=32 * 1024 * 1024,
        ),
    )(x2, *weights)
    return out2.reshape(B, S, E)


def init_params(key, embed=EMBED):
    ks = jax.random.split(key, 8)
    s = 1.0 / math.sqrt(embed)
    s4 = 1.0 / math.sqrt(4 * embed)
    return {
        "ln1_g": jnp.ones((embed,), jnp.float32),
        "ln1_b": jnp.zeros((embed,), jnp.float32),
        "wq": jax.random.normal(ks[0], (embed, embed), jnp.float32) * s,
        "wk": jax.random.normal(ks[1], (embed, embed), jnp.float32) * s,
        "wv": jax.random.normal(ks[2], (embed, embed), jnp.float32) * s,
        "wp": jax.random.normal(ks[3], (embed, embed), jnp.float32) * s,
        "bp": jax.random.normal(ks[4], (embed,), jnp.float32) * s,
        "ln2_g": jnp.ones((embed,), jnp.float32),
        "ln2_b": jnp.zeros((embed,), jnp.float32),
        "w1": jax.random.normal(ks[5], (embed, 4 * embed), jnp.float32) * s,
        "b1": jnp.zeros((4 * embed,), jnp.float32),
        "w2": jax.random.normal(ks[6], (4 * embed, embed), jnp.float32) * s4,
        "b2": jnp.zeros((embed,), jnp.float32),
    }


def transformer_block_ref(x, p):
    """Pure-JAX f32 reference mirroring the PyTorch forward (unfused params)."""
    def ln(v, g, b):
        m = jnp.mean(v, axis=-1, keepdims=True)
        var = jnp.mean((v - m) ** 2, axis=-1, keepdims=True)
        return (v - m) / jnp.sqrt(var + LN_EPS) * g + b

    B, S, E = x.shape
    xn = ln(x, p["ln1_g"], p["ln1_b"])
    q = xn @ p["wq"]; k = xn @ p["wk"]; v = xn @ p["wv"]
    qh = q.reshape(B, S, NUM_HEADS, HEAD_SIZE).transpose(0, 2, 1, 3)
    kh = k.reshape(B, S, NUM_HEADS, HEAD_SIZE).transpose(0, 2, 1, 3)
    vh = v.reshape(B, S, NUM_HEADS, HEAD_SIZE).transpose(0, 2, 1, 3)
    att = jnp.einsum("bhsd,bhtd->bhst", qh, kh) * (E ** -0.5)
    mask = jnp.tril(jnp.ones((S, S), bool))
    att = jnp.where(mask, att, -jnp.inf)
    att = jax.nn.softmax(att, axis=-1)
    out = jnp.einsum("bhst,bhtd->bhsd", att, vh)
    out = out.transpose(0, 2, 1, 3).reshape(B, S, E)
    sa = out @ p["wp"] + p["bp"]
    x1 = x + sa
    x1n = ln(x1, p["ln2_g"], p["ln2_b"])
    ff = jnp.maximum(x1n @ p["w1"] + p["b1"], 0.0) @ p["w2"] + p["b2"]
    return x1 + ff


if __name__ == "__main__":
    key = jax.random.PRNGKey(0)
    kx, kp = jax.random.split(key)

    B, S, E = 4, 32, EMBED   # small shapes; S <= sequence_length (128)
    x = jax.random.normal(kx, (B, S, E), jnp.float32)
    params = init_params(kp)
    prepared = prepare_params(params)

    y = jax.block_until_ready(transformer_block(x, prepared))
    y_ref = transformer_block_ref(x, params)

    # Kernel uses bf16 GEMM operands (MXU-native) with f32 accumulation, so it
    # is compared against the pure-f32 reference at a bf16-appropriate tolerance.
    err = float(jnp.max(jnp.abs(y - y_ref)))
    assert jnp.allclose(y, y_ref, atol=1e-1, rtol=1e-2), err

    print("KERNEL_OK")
</pallas_src>

<mosaic_0001>
module attributes {stable_mosaic.version = 11 : i64} {
  func.func @transformer_block_kernel(%arg0: i32, %arg1: memref<64x64xf32, #tpu.memory_space<vmem>>, %arg2: memref<1x64xf32, #tpu.memory_space<vmem>>, %arg3: memref<1x64xf32, #tpu.memory_space<vmem>>, %arg4: memref<64x192xbf16, #tpu.memory_space<vmem>>, %arg5: memref<64x64xbf16, #tpu.memory_space<vmem>>, %arg6: memref<1x64xf32, #tpu.memory_space<vmem>>, %arg7: memref<1x64xf32, #tpu.memory_space<vmem>>, %arg8: memref<1x64xf32, #tpu.memory_space<vmem>>, %arg9: memref<64x256xbf16, #tpu.memory_space<vmem>>, %arg10: memref<1x256xf32, #tpu.memory_space<vmem>>, %arg11: memref<256x64xbf16, #tpu.memory_space<vmem>>, %arg12: memref<1x64xf32, #tpu.memory_space<vmem>>, %arg13: memref<64x64xf32, #tpu.memory_space<vmem>>, %arg14: memref<64x192xbf16, #tpu.memory_space<vmem>>, %arg15: memref<64x64xf32, #tpu.memory_space<vmem>>, %arg16: memref<32x64xbf16, #tpu.memory_space<vmem>>) attributes {dimension_semantics = [#tpu.dimension_semantics<parallel>], iteration_bounds = array<i64: 2>, scalar_prefetch = 0 : i64, scratch_operands = 3 : i64, tpu.core_type = #tpu.core_type<tc>, window_params = [{transform_indices = @transform_0, window_bounds = array<i64: 64, 64>}, {pipeline_mode = #tpu.pipeline_mode<synchronous>, transform_indices = @transform_1, window_bounds = array<i64: 1, 64>}, {pipeline_mode = #tpu.pipeline_mode<synchronous>, transform_indices = @transform_2, window_bounds = array<i64: 1, 64>}, {pipeline_mode = #tpu.pipeline_mode<synchronous>, transform_indices = @transform_3, window_bounds = array<i64: 64, 192>}, {pipeline_mode = #tpu.pipeline_mode<synchronous>, transform_indices = @transform_4, window_bounds = array<i64: 64, 64>}, {pipeline_mode = #tpu.pipeline_mode<synchronous>, transform_indices = @transform_5, window_bounds = array<i64: 1, 64>}, {pipeline_mode = #tpu.pipeline_mode<synchronous>, transform_indices = @transform_6, window_bounds = array<i64: 1, 64>}, {pipeline_mode = #tpu.pipeline_mode<synchronous>, transform_indices = @transform_7, window_bounds = array<i64: 1, 64>}, {pipeline_mode = #tpu.pipeline_mode<synchronous>, transform_indices = @transform_8, window_bounds = array<i64: 64, 256>}, {pipeline_mode = #tpu.pipeline_mode<synchronous>, transform_indices = @transform_9, window_bounds = array<i64: 1, 256>}, {pipeline_mode = #tpu.pipeline_mode<synchronous>, transform_indices = @transform_10, window_bounds = array<i64: 256, 64>}, {pipeline_mode = #tpu.pipeline_mode<synchronous>, transform_indices = @transform_11, window_bounds = array<i64: 1, 64>}, {transform_indices = @transform_12, window_bounds = array<i64: 64, 64>}]} {
    %c0 = arith.constant 0 : index
    %c0_0 = arith.constant 0 : index
    %0 = vector.load %arg1[%c0, %c0_0] : memref<64x64xf32, #tpu.memory_space<vmem>>, vector<64x64xf32>
    %c0_1 = arith.constant 0 : index
    %c0_2 = arith.constant 0 : index
    %1 = vector.load %arg2[%c0_1, %c0_2] : memref<1x64xf32, #tpu.memory_space<vmem>>, vector<1x64xf32>
    %c0_3 = arith.constant 0 : index
    %c0_4 = arith.constant 0 : index
    %2 = vector.load %arg3[%c0_3, %c0_4] : memref<1x64xf32, #tpu.memory_space<vmem>>, vector<1x64xf32>
    %cst = arith.constant dense<0.000000e+00> : vector<64xf32>
    %3 = vector.multi_reduction <add>, %0, %cst [1] : vector<64x64xf32> to vector<64xf32>
    %4 = vector.shape_cast %3 : vector<64xf32> to vector<64x1xf32>
    %cst_5 = arith.constant 6.400000e+01 : f32
    %5 = vector.broadcast %cst_5 : f32 to vector<64x1xf32>
    %6 = arith.divf %4, %5 : vector<64x1xf32>
    %7 = vector.broadcast %6 : vector<64x1xf32> to vector<64x64xf32>
    %8 = arith.subf %0, %7 : vector<64x64xf32>
    %9 = arith.mulf %8, %8 : vector<64x64xf32>
    %cst_6 = arith.constant dense<0.000000e+00> : vector<64xf32>
    %10 = vector.multi_reduction <add>, %9, %cst_6 [1] : vector<64x64xf32> to vector<64xf32>
    %11 = vector.shape_cast %10 : vector<64xf32> to vector<64x1xf32>
    %cst_7 = arith.constant 6.400000e+01 : f32
    %12 = vector.broadcast %cst_7 : f32 to vector<64x1xf32>
    %13 = arith.divf %11, %12 : vector<64x1xf32>
    %14 = vector.broadcast %6 : vector<64x1xf32> to vector<64x64xf32>
    %15 = arith.subf %0, %14 : vector<64x64xf32>
    %cst_8 = arith.constant 9.99999974E-6 : f32
    %16 = vector.broadcast %cst_8 : f32 to vector<64x1xf32>
    %17 = arith.addf %13, %16 : vector<64x1xf32>
    %18 = math.rsqrt %17 : vector<64x1xf32>
    %19 = vector.broadcast %18 : vector<64x1xf32> to vector<64x64xf32>
    %20 = arith.mulf %15, %19 : vector<64x64xf32>
    %21 = vector.broadcast %1 : vector<1x64xf32> to vector<64x64xf32>
    %22 = arith.mulf %20, %21 : vector<64x64xf32>
    %23 = vector.broadcast %2 : vector<1x64xf32> to vector<64x64xf32>
    %24 = arith.addf %22, %23 : vector<64x64xf32>
    %25 = arith.truncf %24 : vector<64x64xf32> to vector<64x64xbf16>
    %c0_9 = arith.constant 0 : index
    %c0_10 = arith.constant 0 : index
    %26 = vector.load %arg4[%c0_9, %c0_10] : memref<64x192xbf16, #tpu.memory_space<vmem>>, vector<64x192xbf16>
    %cst_11 = arith.constant dense<0.000000e+00> : vector<64x192xf32>
    %27 = tpu.matmul %25, %26, %cst_11 {dimension_numbers = #tpu.dot_dimension_numbers<[1], [0], [0], [1], [0, 0, 1, 1], [], []>} : vector<64x64xbf16>, vector<64x192xbf16>, vector<64x192xf32> -> vector<64x192xf32>
    %28 = arith.truncf %27 : vector<64x192xf32> to vector<64x192xbf16>
    %c0_12 = arith.constant 0 : index
    %c0_13 = arith.constant 0 : index
    %29 = vector.load %arg14[%c0_12, %c0_13] : memref<64x192xbf16, #tpu.memory_space<vmem>>, vector<64x192xbf16>
    tpu.vector_store %arg14[%c0_12, %c0_13], %28 {strides = array<i32>} : memref<64x192xbf16, #tpu.memory_space<vmem>>, vector<64x192xbf16>,
    %30 = tpu.iota {dimensions = array<i32: 0>} : vector<32x32xi32>
    %31 = tpu.iota {dimensions = array<i32: 1>} : vector<32x32xi32>
    %32 = arith.cmpi sge, %30, %31 : vector<32x32xi32>
    %c0_14 = arith.constant 0 : index
    %c0_15 = arith.constant 0 : index
    %33 = vector.load %arg5[%c0_14, %c0_15] : memref<64x64xbf16, #tpu.memory_space<vmem>>, vector<64x64xbf16>
    %c0_16 = arith.constant 0 : index
    %c0_17 = arith.constant 0 : index
    %34 = vector.load %arg6[%c0_16, %c0_17] : memref<1x64xf32, #tpu.memory_space<vmem>>, vector<1x64xf32>
    %cst_18 = arith.constant -1.000000e+30 : f32
    %c0_i32 = arith.constant 0 : i32
    %c2_i32 = arith.constant 2 : i32
    %35 = arith.addi %c0_i32, %c2_i32 : i32
    %c1_i32 = arith.constant 1 : i32
    scf.for %arg17 = %c0_i32 to %35 step %c1_i32  : i32 {
      %c1_i32_44 = arith.constant 1 : i32
      %77 = arith.muli %arg17, %c1_i32_44 : i32
      %c0_i32_45 = arith.constant 0 : i32
      %78 = arith.addi %c0_i32_45, %77 : i32
      %c32_i32 = arith.constant 32 : i32
      %79 = arith.muli %78, %c32_i32 : i32
      %80 = tpu.assume_multiple %79, 8 : i32
      %81 = arith.index_cast %80 : i32 to index
      %c0_46 = arith.constant 0 : index
      %82 = vector.load %arg14[%81, %c0_46] : memref<64x192xbf16, #tpu.memory_space<vmem>>, vector<32x16xbf16>
      %83 = arith.index_cast %80 : i32 to index
      %c64 = arith.constant 64 : index
      %84 = vector.load %arg14[%83, %c64] : memref<64x192xbf16, #tpu.memory_space<vmem>>, vector<32x16xbf16>
      %85 = arith.index_cast %80 : i32 to index
      %c128 = arith.constant 128 : index
      %86 = vector.load %arg14[%85, %c128] : memref<64x192xbf16, #tpu.memory_space<vmem>>, vector<32x16xbf16>
      %cst_47 = arith.constant dense<0.000000e+00> : vector<32x32xf32>
      %87 = tpu.matmul %82, %84, %cst_47 {dimension_numbers = #tpu.dot_dimension_numbers<[1], [1], [0], [0], [0, 0, 1, 0], [], []>} : vector<32x16xbf16>, vector<32x16xbf16>, vector<32x32xf32> -> vector<32x32xf32>
      %88 = vector.broadcast %cst_18 : f32 to vector<32x32xf32>
      %89 = arith.select %32, %87, %88 : vector<32x32xi1>, vector<32x32xf32>
      %cst_48 = arith.constant dense<0xFF800000> : vector<32xf32>
      %90 = vector.multi_reduction <maximumf>, %89, %cst_48 [1] : vector<32x32xf32> to vector<32xf32>
      %91 = vector.shape_cast %90 : vector<32xf32> to vector<32x1xf32>
      %92 = vector.broadcast %91 : vector<32x1xf32> to vector<32x32xf32>
      %93 = arith.subf %89, %92 : vector<32x32xf32>
      %94 = math.exp %93 : vector<32x32xf32>
      %cst_49 = arith.constant dense<0.000000e+00> : vector<32xf32>
      %95 = vector.multi_reduction <add>, %94, %cst_49 [1] : vector<32x32xf32> to vector<32xf32>
      %96 = vector.shape_cast %95 : vector<32xf32> to vector<32x1xf32>
      %97 = arith.truncf %94 : vector<32x32xf32> to vector<32x32xbf16>
      %cst_50 = arith.constant dense<0.000000e+00> : vector<32x16xf32>
      %98 = tpu.matmul %97, %86, %cst_50 {dimension_numbers = #tpu.dot_dimension_numbers<[1], [0], [0], [1], [0, 0, 1, 1], [], []>} : vector<32x32xbf16>, vector<32x16xbf16>, vector<32x16xf32> -> vector<32x16xf32>
      %99 = tpu.reciprocal %96 {approx = true} : vector<32x1xf32> -> vector<32x1xf32>
      %100 = vector.broadcast %99 : vector<32x1xf32> to vector<32x16xf32>
      %101 = arith.mulf %98, %100 : vector<32x16xf32>
      %102 = arith.truncf %101 : vector<32x16xf32> to vector<32x16xbf16>
      %c0_51 = arith.constant 0 : index
      %c0_52 = arith.constant 0 : index
      %103 = vector.load %arg16[%c0_51, %c0_52] : memref<32x64xbf16, #tpu.memory_space<vmem>>, vector<32x16xbf16>
      tpu.vector_store %arg16[%c0_51, %c0_52], %102 {strides = array<i32>} : memref<32x64xbf16, #tpu.memory_space<vmem>>, vector<32x16xbf16>,
      %104 = arith.index_cast %80 : i32 to index
      %c16 = arith.constant 16 : index
      %105 = vector.load %arg14[%104, %c16] : memref<64x192xbf16, #tpu.memory_space<vmem>>, vector<32x16xbf16>
      %106 = arith.index_cast %80 : i32 to index
      %c80 = arith.constant 80 : index
      %107 = vector.load %arg14[%106, %c80] : memref<64x192xbf16, #tpu.memory_space<vmem>>, vector<32x16xbf16>
      %108 = arith.index_cast %80 : i32 to index
      %c144 = arith.constant 144 : index
      %109 = vector.load %arg14[%108, %c144] : memref<64x192xbf16, #tpu.memory_space<vmem>>, vector<32x16xbf16>
      %cst_53 = arith.constant dense<0.000000e+00> : vector<32x32xf32>
      %110 = tpu.matmul %105, %107, %cst_53 {dimension_numbers = #tpu.dot_dimension_numbers<[1], [1], [0], [0], [0, 0, 1, 0], [], []>} : vector<32x16xbf16>, vector<32x16xbf16>, vector<32x32xf32> -> vector<32x32xf32>
      %111 = vector.broadcast %cst_18 : f32 to vector<32x32xf32>
      %112 = arith.select %32, %110, %111 : vector<32x32xi1>, vector<32x32xf32>
      %cst_54 = arith.constant dense<0xFF800000> : vector<32xf32>
      %113 = vector.multi_reduction <maximumf>, %112, %cst_54 [1] : vector<32x32xf32> to vector<32xf32>
      %114 = vector.shape_cast %113 : vector<32xf32> to vector<32x1xf32>
      %115 = vector.broadcast %114 : vector<32x1xf32> to vector<32x32xf32>
      %116 = arith.subf %112, %115 : vector<32x32xf32>
      %117 = math.exp %116 : vector<32x32xf32>
      %cst_55 = arith.constant dense<0.000000e+00> : vector<32xf32>
      %118 = vector.multi_reduction <add>, %117, %cst_55 [1] : vector<32x32xf32> to vector<32xf32>
      %119 = vector.shape_cast %118 : vector<32xf32> to vector<32x1xf32>
      %120 = arith.truncf %117 : vector<32x32xf32> to vector<32x32xbf16>
      %cst_56 = arith.constant dense<0.000000e+00> : vector<32x16xf32>
      %121 = tpu.matmul %120, %109, %cst_56 {dimension_numbers = #tpu.dot_dimension_numbers<[1], [0], [0], [1], [0, 0, 1, 1], [], []>} : vector<32x32xbf16>, vector<32x16xbf16>, vector<32x16xf32> -> vector<32x16xf32>
      %122 = tpu.reciprocal %119 {approx = true} : vector<32x1xf32> -> vector<32x1xf32>
      %123 = vector.broadcast %122 : vector<32x1xf32> to vector<32x16xf32>
      %124 = arith.mulf %121, %123 : vector<32x16xf32>
      %125 = arith.truncf %124 : vector<32x16xf32> to vector<32x16xbf16>
      %c0_57 = arith.constant 0 : index
      %c16_58 = arith.constant 16 : index
      %126 = vector.load %arg16[%c0_57, %c16_58] : memref<32x64xbf16, #tpu.memory_space<vmem>>, vector<32x16xbf16>
      tpu.vector_store %arg16[%c0_57, %c16_58], %125 {strides = array<i32>} : memref<32x64xbf16, #tpu.memory_space<vmem>>, vector<32x16xbf16>,
      %127 = arith.index_cast %80 : i32 to index
      %c32 = arith.constant 32 : index
      %128 = vector.load %arg14[%127, %c32] : memref<64x192xbf16, #tpu.memory_space<vmem>>, vector<32x16xbf16>
      %129 = arith.index_cast %80 : i32 to index
      %c96 = arith.constant 96 : index
      %130 = vector.load %arg14[%129, %c96] : memref<64x192xbf16, #tpu.memory_space<vmem>>, vector<32x16xbf16>
      %131 = arith.index_cast %80 : i32 to index
      %c160 = arith.constant 160 : index
      %132 = vector.load %arg14[%131, %c160] : memref<64x192xbf16, #tpu.memory_space<vmem>>, vector<32x16xbf16>
      %cst_59 = arith.constant dense<0.000000e+00> : vector<32x32xf32>
      %133 = tpu.matmul %128, %130, %cst_59 {dimension_numbers = #tpu.dot_dimension_numbers<[1], [1], [0], [0], [0, 0, 1, 0], [], []>} : vector<32x16xbf16>, vector<32x16xbf16>, vector<32x32xf32> -> vector<32x32xf32>
      %134 = vector.broadcast %cst_18 : f32 to vector<32x32xf32>
      %135 = arith.select %32, %133, %134 : vector<32x32xi1>, vector<32x32xf32>
      %cst_60 = arith.constant dense<0xFF800000> : vector<32xf32>
      %136 = vector.multi_reduction <maximumf>, %135, %cst_60 [1] : vector<32x32xf32> to vector<32xf32>
      %137 = vector.shape_cast %136 : vector<32xf32> to vector<32x1xf32>
      %138 = vector.broadcast %137 : vector<32x1xf32> to vector<32x32xf32>
      %139 = arith.subf %135, %138 : vector<32x32xf32>
      %140 = math.exp %139 : vector<32x32xf32>
      %cst_61 = arith.constant dense<0.000000e+00> : vector<32xf32>
      %141 = vector.multi_reduction <add>, %140, %cst_61 [1] : vector<32x32xf32> to vector<32xf32>
      %142 = vector.shape_cast %141 : vector<32xf32> to vector<32x1xf32>
      %143 = arith.truncf %140 : vector<32x32xf32> to vector<32x32xbf16>
      %cst_62 = arith.constant dense<0.000000e+00> : vector<32x16xf32>
      %144 = tpu.matmul %143, %132, %cst_62 {dimension_numbers = #tpu.dot_dimension_numbers<[1], [0], [0], [1], [0, 0, 1, 1], [], []>} : vector<32x32xbf16>, vector<32x16xbf16>, vector<32x16xf32> -> vector<32x16xf32>
      %145 = tpu.reciprocal %142 {approx = true} : vector<32x1xf32> -> vector<32x1xf32>
      %146 = vector.broadcast %145 : vector<32x1xf32> to vector<32x16xf32>
      %147 = arith.mulf %144, %146 : vector<32x16xf32>
      %148 = arith.truncf %147 : vector<32x16xf32> to vector<32x16xbf16>
      %c0_63 = arith.constant 0 : index
      %c32_64 = arith.constant 32 : index
      %149 = vector.load %arg16[%c0_63, %c32_64] : memref<32x64xbf16, #tpu.memory_space<vmem>>, vector<32x16xbf16>
      tpu.vector_store %arg16[%c0_63, %c32_64], %148 {strides = array<i32>} : memref<32x64xbf16, #tpu.memory_space<vmem>>, vector<32x16xbf16>,
      %150 = arith.index_cast %80 : i32 to index
      %c48 = arith.constant 48 : index
      %151 = vector.load %arg14[%150, %c48] : memref<64x192xbf16, #tpu.memory_space<vmem>>, vector<32x16xbf16>
      %152 = arith.index_cast %80 : i32 to index
      %c112 = arith.constant 112 : index
      %153 = vector.load %arg14[%152, %c112] : memref<64x192xbf16, #tpu.memory_space<vmem>>, vector<32x16xbf16>
      %154 = arith.index_cast %80 : i32 to index
      %c176 = arith.constant 176 : index
      %155 = vector.load %arg14[%154, %c176] : memref<64x192xbf16, #tpu.memory_space<vmem>>, vector<32x16xbf16>
      %cst_65 = arith.constant dense<0.000000e+00> : vector<32x32xf32>
      %156 = tpu.matmul %151, %153, %cst_65 {dimension_numbers = #tpu.dot_dimension_numbers<[1], [1], [0], [0], [0, 0, 1, 0], [], []>} : vector<32x16xbf16>, vector<32x16xbf16>, vector<32x32xf32> -> vector<32x32xf32>
      %157 = vector.broadcast %cst_18 : f32 to vector<32x32xf32>
      %158 = arith.select %32, %156, %157 : vector<32x32xi1>, vector<32x32xf32>
      %cst_66 = arith.constant dense<0xFF800000> : vector<32xf32>
      %159 = vector.multi_reduction <maximumf>, %158, %cst_66 [1] : vector<32x32xf32> to vector<32xf32>
      %160 = vector.shape_cast %159 : vector<32xf32> to vector<32x1xf32>
      %161 = vector.broadcast %160 : vector<32x1xf32> to vector<32x32xf32>
      %162 = arith.subf %158, %161 : vector<32x32xf32>
      %163 = math.exp %162 : vector<32x32xf32>
      %cst_67 = arith.constant dense<0.000000e+00> : vector<32xf32>
      %164 = vector.multi_reduction <add>, %163, %cst_67 [1] : vector<32x32xf32> to vector<32xf32>
      %165 = vector.shape_cast %164 : vector<32xf32> to vector<32x1xf32>
      %166 = arith.truncf %163 : vector<32x32xf32> to vector<32x32xbf16>
      %cst_68 = arith.constant dense<0.000000e+00> : vector<32x16xf32>
      %167 = tpu.matmul %166, %155, %cst_68 {dimension_numbers = #tpu.dot_dimension_numbers<[1], [0], [0], [1], [0, 0, 1, 1], [], []>} : vector<32x32xbf16>, vector<32x16xbf16>, vector<32x16xf32> -> vector<32x16xf32>
      %168 = tpu.reciprocal %165 {approx = true} : vector<32x1xf32> -> vector<32x1xf32>
      %169 = vector.broadcast %168 : vector<32x1xf32> to vector<32x16xf32>
      %170 = arith.mulf %167, %169 : vector<32x16xf32>
      %171 = arith.truncf %170 : vector<32x16xf32> to vector<32x16xbf16>
      %c0_69 = arith.constant 0 : index
      %c48_70 = arith.constant 48 : index
      %172 = vector.load %arg16[%c0_69, %c48_70] : memref<32x64xbf16, #tpu.memory_space<vmem>>, vector<32x16xbf16>
      tpu.vector_store %arg16[%c0_69, %c48_70], %171 {strides = array<i32>} : memref<32x64xbf16, #tpu.memory_space<vmem>>, vector<32x16xbf16>,
      %c0_71 = arith.constant 0 : index
      %c0_72 = arith.constant 0 : index
      %173 = vector.load %arg16[%c0_71, %c0_72] : memref<32x64xbf16, #tpu.memory_space<vmem>>, vector<32x64xbf16>
      %cst_73 = arith.constant dense<0.000000e+00> : vector<32x64xf32>
      %174 = tpu.matmul %173, %33, %cst_73 {dimension_numbers = #tpu.dot_dimension_numbers<[1], [0], [0], [1], [0, 0, 1, 1], [], []>} : vector<32x64xbf16>, vector<64x64xbf16>, vector<32x64xf32> -> vector<32x64xf32>
      %175 = arith.index_cast %80 : i32 to index
      %c0_74 = arith.constant 0 : index
      %176 = vector.load %arg1[%175, %c0_74] : memref<64x64xf32, #tpu.memory_space<vmem>>, vector<32x64xf32>
      %177 = arith.addf %176, %174 : vector<32x64xf32>
      %178 = vector.broadcast %34 : vector<1x64xf32> to vector<32x64xf32>
      %179 = arith.addf %177, %178 : vector<32x64xf32>
      %180 = arith.index_cast %80 : i32 to index
      %c0_75 = arith.constant 0 : index
      %181 = vector.load %arg15[%180, %c0_75] : memref<64x64xf32, #tpu.memory_space<vmem>>, vector<32x64xf32>
      tpu.vector_store %arg15[%180, %c0_75], %179 {strides = array<i32>} : memref<64x64xf32, #tpu.memory_space<vmem>>, vector<32x64xf32>,
    }
    %c2_i32_19 = arith.constant 2 : i32
    %c0_20 = arith.constant 0 : index
    %c0_21 = arith.constant 0 : index
    %36 = vector.load %arg15[%c0_20, %c0_21] : memref<64x64xf32, #tpu.memory_space<vmem>>, vector<64x64xf32>
    %c0_22 = arith.constant 0 : index
    %c0_23 = arith.constant 0 : index
    %37 = vector.load %arg7[%c0_22, %c0_23] : memref<1x64xf32, #tpu.memory_space<vmem>>, vector<1x64xf32>
    %c0_24 = arith.constant 0 : index
    %c0_25 = arith.constant 0 : index
    %38 = vector.load %arg8[%c0_24, %c0_25] : memref<1x64xf32, #tpu.memory_space<vmem>>, vector<1x64xf32>
    %cst_26 = arith.constant dense<0.000000e+00> : vector<64xf32>
    %39 = vector.multi_reduction <add>, %36, %cst_26 [1] : vector<64x64xf32> to vector<64xf32>
    %40 = vector.shape_cast %39 : vector<64xf32> to vector<64x1xf32>
    %cst_27 = arith.constant 6.400000e+01 : f32
    %41 = vector.broadcast %cst_27 : f32 to vector<64x1xf32>
    %42 = arith.divf %40, %41 : vector<64x1xf32>
    %43 = vector.broadcast %42 : vector<64x1xf32> to vector<64x64xf32>
    %44 = arith.subf %36, %43 : vector<64x64xf32>
    %45 = arith.mulf %44, %44 : vector<64x64xf32>
    %cst_28 = arith.constant dense<0.000000e+00> : vector<64xf32>
    %46 = vector.multi_reduction <add>, %45, %cst_28 [1] : vector<64x64xf32> to vector<64xf32>
    %47 = vector.shape_cast %46 : vector<64xf32> to vector<64x1xf32>
    %cst_29 = arith.constant 6.400000e+01 : f32
    %48 = vector.broadcast %cst_29 : f32 to vector<64x1xf32>
    %49 = arith.divf %47, %48 : vector<64x1xf32>
    %50 = vector.broadcast %42 : vector<64x1xf32> to vector<64x64xf32>
    %51 = arith.subf %36, %50 : vector<64x64xf32>
    %cst_30 = arith.constant 9.99999974E-6 : f32
    %52 = vector.broadcast %cst_30 : f32 to vector<64x1xf32>
    %53 = arith.addf %49, %52 : vector<64x1xf32>
    %54 = math.rsqrt %53 : vector<64x1xf32>
    %55 = vector.broadcast %54 : vector<64x1xf32> to vector<64x64xf32>
    %56 = arith.mulf %51, %55 : vector<64x64xf32>
    %57 = vector.broadcast %37 : vector<1x64xf32> to vector<64x64xf32>
    %58 = arith.mulf %56, %57 : vector<64x64xf32>
    %59 = vector.broadcast %38 : vector<1x64xf32> to vector<64x64xf32>
    %60 = arith.addf %58, %59 : vector<64x64xf32>
    %61 = arith.truncf %60 : vector<64x64xf32> to vector<64x64xbf16>
    %c0_31 = arith.constant 0 : index
    %c0_32 = arith.constant 0 : index
    %62 = vector.load %arg9[%c0_31, %c0_32] : memref<64x256xbf16, #tpu.memory_space<vmem>>, vector<64x256xbf16>
    %cst_33 = arith.constant dense<0.000000e+00> : vector<64x256xf32>
    %63 = tpu.matmul %61, %62, %cst_33 {dimension_numbers = #tpu.dot_dimension_numbers<[1], [0], [0], [1], [0, 0, 1, 1], [], []>} : vector<64x64xbf16>, vector<64x256xbf16>, vector<64x256xf32> -> vector<64x256xf32>
    %c0_34 = arith.constant 0 : index
    %c0_35 = arith.constant 0 : index
    %64 = vector.load %arg10[%c0_34, %c0_35] : memref<1x256xf32, #tpu.memory_space<vmem>>, vector<1x256xf32>
    %65 = vector.broadcast %64 : vector<1x256xf32> to vector<64x256xf32>
    %66 = arith.addf %63, %65 : vector<64x256xf32>
    %cst_36 = arith.constant 0.000000e+00 : f32
    %67 = vector.broadcast %cst_36 : f32 to vector<64x256xf32>
    %68 = arith.maximumf %66, %67 : vector<64x256xf32>
    %69 = arith.truncf %68 : vector<64x256xf32> to vector<64x256xbf16>
    %c0_37 = arith.constant 0 : index
    %c0_38 = arith.constant 0 : index
    %70 = vector.load %arg11[%c0_37, %c0_38] : memref<256x64xbf16, #tpu.memory_space<vmem>>, vector<256x64xbf16>
    %cst_39 = arith.constant dense<0.000000e+00> : vector<64x64xf32>
    %71 = tpu.matmul %69, %70, %cst_39 {dimension_numbers = #tpu.dot_dimension_numbers<[1], [0], [0], [1], [0, 0, 1, 1], [], []>} : vector<64x256xbf16>, vector<256x64xbf16>, vector<64x64xf32> -> vector<64x64xf32>
    %c0_40 = arith.constant 0 : index
    %c0_41 = arith.constant 0 : index
    %72 = vector.load %arg12[%c0_40, %c0_41] : memref<1x64xf32, #tpu.memory_space<vmem>>, vector<1x64xf32>
    %73 = vector.broadcast %72 : vector<1x64xf32> to vector<64x64xf32>
    %74 = arith.addf %71, %73 : vector<64x64xf32>
    %75 = arith.addf %36, %74 : vector<64x64xf32>
    %c0_42 = arith.constant 0 : index
    %c0_43 = arith.constant 0 : index
    %76 = vector.load %arg13[%c0_42, %c0_43] : memref<64x64xf32, #tpu.memory_space<vmem>>, vector<64x64xf32>
    tpu.vector_store %arg13[%c0_42, %c0_43], %75 {strides = array<i32>} : memref<64x64xf32, #tpu.memory_space<vmem>>, vector<64x64xf32>,
    return
  }
  func.func @transform_0(%arg0: i32) -> (i32, i32) {
    %c0_i32 = arith.constant 0 : i32
    %c0_i32_0 = arith.constant 0 : i32
    return %arg0, %c0_i32 : i32, i32
  }
  func.func @transform_1(%arg0: i32) -> (i32, i32) {
    %c0_i32 = arith.constant 0 : i32
    %c0_i32_0 = arith.constant 0 : i32
    %c0_i32_1 = arith.constant 0 : i32
    return %c0_i32, %c0_i32_0 : i32, i32
  }
  func.func @transform_2(%arg0: i32) -> (i32, i32) {
    %c0_i32 = arith.constant 0 : i32
    %c0_i32_0 = arith.constant 0 : i32
    %c0_i32_1 = arith.constant 0 : i32
    return %c0_i32, %c0_i32_0 : i32, i32
  }
  func.func @transform_3(%arg0: i32) -> (i32, i32) {
    %c0_i32 = arith.constant 0 : i32
    %c0_i32_0 = arith.constant 0 : i32
    %c0_i32_1 = arith.constant 0 : i32
    return %c0_i32, %c0_i32_0 : i32, i32
  }
  func.func @transform_4(%arg0: i32) -> (i32, i32) {
    %c0_i32 = arith.constant 0 : i32
    %c0_i32_0 = arith.constant 0 : i32
    %c0_i32_1 = arith.constant 0 : i32
    return %c0_i32, %c0_i32_0 : i32, i32
  }
  func.func @transform_5(%arg0: i32) -> (i32, i32) {
    %c0_i32 = arith.constant 0 : i32
    %c0_i32_0 = arith.constant 0 : i32
    %c0_i32_1 = arith.constant 0 : i32
    return %c0_i32, %c0_i32_0 : i32, i32
  }
  func.func @transform_6(%arg0: i32) -> (i32, i32) {
    %c0_i32 = arith.constant 0 : i32
    %c0_i32_0 = arith.constant 0 : i32
    %c0_i32_1 = arith.constant 0 : i32
    return %c0_i32, %c0_i32_0 : i32, i32
  }
  func.func @transform_7(%arg0: i32) -> (i32, i32) {
    %c0_i32 = arith.constant 0 : i32
    %c0_i32_0 = arith.constant 0 : i32
    %c0_i32_1 = arith.constant 0 : i32
    return %c0_i32, %c0_i32_0 : i32, i32
  }
  func.func @transform_8(%arg0: i32) -> (i32, i32) {
    %c0_i32 = arith.constant 0 : i32
    %c0_i32_0 = arith.constant 0 : i32
    %c0_i32_1 = arith.constant 0 : i32
    return %c0_i32, %c0_i32_0 : i32, i32
  }
  func.func @transform_9(%arg0: i32) -> (i32, i32) {
    %c0_i32 = arith.constant 0 : i32
    %c0_i32_0 = arith.constant 0 : i32
    %c0_i32_1 = arith.constant 0 : i32
    return %c0_i32, %c0_i32_0 : i32, i32
  }
  func.func @transform_10(%arg0: i32) -> (i32, i32) {
    %c0_i32 = arith.constant 0 : i32
    %c0_i32_0 = arith.constant 0 : i32
    %c0_i32_1 = arith.constant 0 : i32
    return %c0_i32, %c0_i32_0 : i32, i32
  }
  func.func @transform_11(%arg0: i32) -> (i32, i32) {
    %c0_i32 = arith.constant 0 : i32
    %c0_i32_0 = arith.constant 0 : i32
    %c0_i32_1 = arith.constant 0 : i32
    return %c0_i32, %c0_i32_0 : i32, i32
  }
  func.func @transform_12(%arg0: i32) -> (i32, i32) {
    %c0_i32 = arith.constant 0 : i32
    %c0_i32_0 = arith.constant 0 : i32
    return %arg0, %c0_i32 : i32, i32
  }
}

</mosaic_0001>

<bundles_post_ra>
// kernel: tpu_custom_call.1
= control target key start
LH: loop header
LB: loop body
LE: loop exit
PB: predicated region body
PF: predicated region fallthrough
CT: control target
= control target key end

     0   :  { %s3041_s21 = smov 0   ;;  %s3769_s0 = inlined_call_operand.vmem [shape: f32[128,64], index: 0, kind: input, shape index: {}]   ;;  %s3770_s1 = inlined_call_operand.vmem [shape: f32[1,64], index: 1, kind: input, shape index: {}]   ;;  %s3771_s2 = inlined_call_operand.vmem [shape: f32[1,64], index: 2, kind: input, shape index: {}]   ;;  %s3772_s3 = inlined_call_operand.vmem [shape: bf16[64,192], index: 3, kind: input, shape index: {}]   ;;  %s3773_s4 = inlined_call_operand.vmem [shape: bf16[64,64], index: 4, kind: input, shape index: {}]   ;;  %s3774_s5 = inlined_call_operand.vmem [shape: f32[1,64], index: 5, kind: input, shape index: {}]   ;;  %s3775_s6 = inlined_call_operand.vmem [shape: f32[1,64], index: 6, kind: input, shape index: {}]   ;;  %s3776_s7 = inlined_call_operand.vmem [shape: f32[1,64], index: 7, kind: input, shape index: {}]   ;;  %s3777_s8 = inlined_call_operand.vmem [shape: bf16[64,256], index: 8, kind: input, shape index: {}]   ;;  %s3778_s9 = inlined_call_operand.vmem [shape: f32[1,256], index: 9, kind: input, shape index: {}]   ;;  %s3779_s10 = inlined_call_operand.vmem [shape: bf16[256,64], index: 10, kind: input, shape index: {}]   ;;  %s3780_s11 = inlined_call_operand.vmem [shape: f32[1,64], index: 11, kind: input, shape index: {}]   ;;  %s3781_s12 = inlined_call_operand.vmem [shape: f32[128,64], index: 12, kind: output, shape index: {}]  }
   0x1 LB: > { %s2439_s22 = sadd.s32 4294967295, %s2962_s21   ;;  %p2443_p0 = scmp.ge.s32.totalorder %s2962_s21, 1  ;;  %s2962_s21 = sphi %s3041_s21, %s22_s21  }
   0x2   : > { %p363_p1 = scmp.lt.s32.totalorder %s2962_s21, 3 }
   0x4   : > { %p364_p2 = pnand %p2443_p0, %p363_p1 }
   0x5   : > { %s2444_s23 = sshll.u32 (!%p364_p2), %s2439_s22, 3  ;;  %s3247_s22 = smov (!%p364_p2), 0  }
   0x6   : > { %367 = sbr.rel (%p364_p2) target bundleno = 3099 (0xc1b), region = 68  ;;  %p406_p3 = scmp.lt.s32.totalorder (!%p364_p2), %s2444_s23, 15 }
   0xb   : > { %s3785_s23 = smov (!%p406_p3, %s2444_s23), 15  ;;  %vm428_vm0 = vcmask 523264   ;;  %v2798_v56 = vld [vmem:[%s3772_s3 + $0x34] ss:$8 sps:$4 sm:$0xff]   ;;  %v2800_v57 = vld [vmem:[%s3772_s3 + $0x30] ss:$8 sps:$4 sm:$0xff]  }
   0xc   : > { %s2445_s24 = sshll.u32 %s3785_s23, 3  ;;  %634 = vmatprep.subr.bf16.mxu0 %v2798_v56  ;;  %2742 = vmatprep.subr.bf16.mxu1 %v2798_v56  ;;  %v2801_v58 = vld [vmem:[%s3772_s3 + $0x24] ss:$8 sps:$4 sm:$0xff]   ;;  %v2803_v59 = vld [vmem:[%s3772_s3 + $0x20] ss:$8 sps:$4 sm:$0xff]   ;;  %v2968_v63 = vmov 0  }
   0xd   : > { %s3052_s27 = scalar_lea.vmem %s3769_s0, %s2445_s24  ;;  %s3057_s30 = scalar_lea.vmem %s3781_s12, %s2445_s24  ;;  %635 = vmatpush1.bf16.msra.mxu0 %v2800_v57  ;;  %2746 = vmatpush1.bf16.msra.mxu1 %v2800_v57  ;;  %v2804_v60 = vld [vmem:[%s3772_s3 + $0x14] ss:$8 sps:$4 sm:$0xff]   ;;  %v2806_v61 = vld [vmem:[%s3772_s3 + $0x10] ss:$8 sps:$4 sm:$0xff]   ;;  %v2807_v62 = vld [vmem:[%s3772_s3 + $0x4] ss:$8 sps:$4 sm:$0xff]  }
   0xe   : > { %v418_v0 = vld [vmem:[%s3052_s27] sm:$0xff]  ;;  %v419_v2 = vld [vmem:[%s3052_s27 + $0x8] sm:$0xff]  ;;  %v420_v8 = vld [vmem:[%s3052_s27 + $0x10] sm:$0xff]  ;;  %636 = vmatprep.subr.bf16.mxu0 %v2801_v58  ;;  %2743 = vmatprep.subr.bf16.mxu1 %v2801_v58  ;;  %vm747_vm5 = vcmask 1043456   ;;  %vm748_vm6 = vcmask 523268  }
   0xf   : > { %v422_v1 = vld [vmem:[%s3052_s27 + $0x20] sm:$0xff]  ;;  %v429_v3 = vsel %vm428_vm0, %v418_v0, 0.0  ;;  %v423_v5 = vld [vmem:[%s3052_s27 + $0x28] sm:$0xff]  ;;  %v432_v6 = vsel %vm428_vm0, %v419_v2, 0.0  ;;  %v421_v9 = vld [vmem:[%s3052_s27 + $0x18] sm:$0xff]  ;;  %v435_v10 = vsel %vm428_vm0, %v420_v8, 0.0  ;;  %658 = vmatprep.mubr.bf16.mxu0 %v2968_v63  ;;  %678 = vmatprep.mubr.bf16.mxu1 %v2968_v63 }
  0x10   : > { %v441_v4 = vsel %vm428_vm0, %v422_v1, 0.0  ;;  %430 = vadd.xlane.f32.xlu0 %v429_v3  ;;  %v444_v7 = vsel %vm428_vm0, %v423_v5, 0.0  ;;  %v438_v11 = vsel %vm428_vm0, %v421_v9, 0.0  ;;  %v424_v12 = vld [vmem:[%s3052_s27 + $0x30] sm:$0xff]  ;;  %v425_v13 = vld [vmem:[%s3052_s27 + $0x38] sm:$0xff]  ;;  %vm3227_vm7 = vmor %vm748_vm6, %vm747_vm5 }
  0x11   : > { %442 = vadd.xlane.f32.xlu1 %v441_v4  ;;  %v447_v14 = vsel %vm428_vm0, %v424_v12, 0.0  ;;  %v450_v15 = vsel %vm428_vm0, %v425_v13, 0.0  ;;  %637 = vmatpush1.bf16.msra.mxu0 %v2803_v59 }
  0x12   : > { %2747 = vmatpush1.bf16.msra.mxu1 %v2803_v59  ;;  %638 = vmatprep.subr.bf16.mxu0 %v2804_v60 }
  0x13   : > { %2744 = vmatprep.subr.bf16.mxu1 %v2804_v60 }
  0x14   : > { %433 = vadd.xlane.f32.xlu0 %v432_v6 }
  0x15   : > { %445 = vadd.xlane.f32.xlu1 %v444_v7  ;;  %639 = vmatpush1.bf16.msra.mxu0 %v2806_v61 }
  0x16   : > { %2748 = vmatpush1.bf16.msra.mxu1 %v2806_v61  ;;  %640 = vmatprep.subr.bf16.mxu0 %v2807_v62 }
  0x17   : > { %2745 = vmatprep.subr.bf16.mxu1 %v2807_v62 }
  0x18   : > { %436 = vadd.xlane.f32.xlu0 %v435_v10 }
  0x19   : > { %439 = vadd.xlane.f32.xlu1 %v438_v11 }
  0x1c   : > { %448 = vadd.xlane.f32.xlu0 %v447_v14 }
  0x1d   : > { %451 = vadd.xlane.f32.xlu1 %v450_v15 }
  0x99   : > { %v431_v16 = vpop.xlane.xlu0 %430 }
  0x9a   : > { %v443_v17 = vpop.xlane.xlu1 %442  ;;  %v454_v18 = vmul.f32 0.015625, %v431_v16 }
  0x9b   : > { %v458_v19 = vmul.f32 0.015625, %v443_v17 }
  0x9c   : > { %v3075_v20 = vsub.f32 %v418_v0, %v454_v18  ;;  %v2809_v0 = vld [vmem:[%s3772_s3] ss:$8 sps:$4 sm:$0xff]  }
  0x9d   : > { %v3077_v21 = vsub.f32 %v422_v1, %v458_v19  ;;  %v434_v22 = vpop.xlane.xlu0 %433  ;;  %641 = vmatpush1.bf16.msra.mxu0 %v2809_v0  ;;  %2749 = vmatpush1.bf16.msra.mxu1 %v2809_v0 }
  0x9e   : > { %v446_v23 = vpop.xlane.xlu1 %445  ;;  %v455_v24 = vmul.f32 0.015625, %v434_v22  ;;  %v470_v26 = vmul.f32 %v3075_v20, %v3075_v20 }
  0x9f   : > { %v459_v25 = vmul.f32 0.015625, %v446_v23  ;;  %v474_v27 = vmul.f32 %v3077_v21, %v3077_v21 }
  0xa0   : > { %v3083_v28 = vsub.f32 %v419_v2, %v455_v24  ;;  %v478_v30 = vsel %vm428_vm0, %v470_v26, 0.0 }
  0xa1   : > { %v3085_v29 = vsub.f32 %v423_v5, %v459_v25  ;;  %479 = vadd.xlane.f32.xlu0 %v478_v30  ;;  %v437_v31 = vpop.xlane.xlu0 %436  ;;  %v490_v33 = vsel %vm428_vm0, %v474_v27, 0.0 }
  0xa2   : > { %v440_v32 = vpop.xlane.xlu1 %439  ;;  %v456_v34 = vmul.f32 0.015625, %v437_v31  ;;  %v471_v36 = vmul.f32 %v3083_v28, %v3083_v28  ;;  %v2448_v31 = vld [vmem:[%s3770_s1] ss:$0 sm:$0xff] }
  0xa3   : > { %v457_v35 = vmul.f32 0.015625, %v440_v32  ;;  %v475_v37 = vmul.f32 %v3085_v29, %v3085_v29 }
  0xa4   : > { %v3093_v38 = vsub.f32 %v420_v8, %v456_v34  ;;  %v481_v40 = vsel %vm428_vm0, %v471_v36, 0.0  ;;  %v2449_v36 = vld [vmem:[%s3771_s2] ss:$0 sm:$0xff] }
  0xa5   : > { %v3095_v39 = vsub.f32 %v421_v9, %v457_v35  ;;  %491 = vadd.xlane.f32.xlu0 %v490_v33  ;;  %482 = vadd.xlane.f32.xlu1 %v481_v40  ;;  %v449_v41 = vpop.xlane.xlu0 %448  ;;  %v493_v43 = vsel %vm428_vm0, %v475_v37, 0.0 }
  0xa6   : > { %v452_v42 = vpop.xlane.xlu1 %451  ;;  %v460_v44 = vmul.f32 0.015625, %v449_v41  ;;  %v472_v46 = vmul.f32 %v3093_v38, %v3093_v38 }
  0xa7   : > { %v461_v45 = vmul.f32 0.015625, %v452_v42  ;;  %v473_v47 = vmul.f32 %v3095_v39, %v3095_v39 }
  0xa8   : > { %v3103_v48 = vsub.f32 %v424_v12, %v460_v44  ;;  %v484_v50 = vsel %vm428_vm0, %v472_v46, 0.0 }
  0xa9   : > { %v3105_v49 = vsub.f32 %v425_v13, %v461_v45  ;;  %494 = vadd.xlane.f32.xlu1 %v493_v43  ;;  %485 = vadd.xlane.f32.xlu0 %v484_v50  ;;  %v487_v51 = vsel %vm428_vm0, %v473_v47, 0.0 }
  0xaa   : > { %v476_v52 = vmul.f32 %v3103_v48, %v3103_v48 }
  0xab   : > { %v477_v53 = vmul.f32 %v3105_v49, %v3105_v49 }
  0xac   : > { %v496_v54 = vsel %vm428_vm0, %v476_v52, 0.0 }
  0xad   : > { %488 = vadd.xlane.f32.xlu1 %v487_v51  ;;  %497 = vadd.xlane.f32.xlu0 %v496_v54  ;;  %v499_v55 = vsel %vm428_vm0, %v477_v53, 0.0 }
  0xb1   : > { %500 = vadd.xlane.f32.xlu1 %v499_v55 }
 0x12a   : > { %v480_v1 = vpop.xlane.xlu0 %479 }
 0x12b   : > { %v502_v2 = vmul.f32 0.015625, %v480_v1 }
 0x12d   : > { %v510_v3 = vadd.f32 1e-05, %v502_v2 }
 0x12e   : > { %v483_v4 = vpop.xlane.xlu1 %482  ;;  %v492_v5 = vpop.xlane.xlu0 %491 }
 0x12f   : > { %2810 = vrsqrt.f32 %v510_v3  ;;  %v503_v6 = vmul.f32 0.015625, %v483_v4  ;;  %v506_v7 = vmul.f32 0.015625, %v492_v5 }
 0x131   : > { %v511_v8 = vadd.f32 1e-05, %v503_v6  ;;  %v514_v9 = vadd.f32 1e-05, %v506_v7  ;;  %v3177_v6 = vld [vmem:[%s3773_s4] sm:$0xf] }
 0x132   : > { %v495_v10 = vpop.xlane.xlu1 %494  ;;  %v486_v11 = vpop.xlane.xlu0 %485  ;;  %v3182_v7 = vld [vmem:[%s3773_s4 + $0x4] sm:$0xf] }
 0x133   : > { %2812 = vrsqrt.f32 %v511_v8  ;;  %v507_v12 = vmul.f32 0.015625, %v495_v10  ;;  %v504_v13 = vmul.f32 0.015625, %v486_v11  ;;  %v3187_v8 = vld [vmem:[%s3773_s4 + $0x8] sm:$0xf]  ;;  %v3205_v10 = vld [vmem:[%s3773_s4 + $0x10] sm:$0xf] }
 0x134   : > { %2814 = vrsqrt.f32 %v514_v9  ;;  %v3200_v9 = vld [vmem:[%s3773_s4 + $0xc] sm:$0xf]  ;;  %v3210_v11 = vld [vmem:[%s3773_s4 + $0x14] sm:$0xf] }
 0x135   : > { %v515_v14 = vadd.f32 1e-05, %v507_v12  ;;  %v512_v15 = vadd.f32 1e-05, %v504_v13  ;;  %v3215_v12 = vld [vmem:[%s3773_s4 + $0x18] sm:$0xf] }
 0x136   : > { %v489_v16 = vpop.xlane.xlu1 %488  ;;  %v498_v17 = vpop.xlane.xlu0 %497  ;;  %v3220_v13 = vld [vmem:[%s3773_s4 + $0x1c] sm:$0xf] }
 0x137   : > { %2816 = vrsqrt.f32 %v515_v14  ;;  %v505_v18 = vmul.f32 0.015625, %v489_v16  ;;  %v508_v19 = vmul.f32 0.015625, %v498_v17  ;;  %v3225_v14 = vld [vmem:[%s3774_s5] ss:$0 sm:$0xff] }
 0x138   : > { %2818 = vrsqrt.f32 %v512_v15 }
 0x139   : > { %v513_v22 = vadd.f32 1e-05, %v505_v18  ;;  %v516_v23 = vadd.f32 1e-05, %v508_v19 }
 0x13a   : > { %v501_v24 = vpop.xlane.xlu1 %500 }
 0x13b   : > { %2820 = vrsqrt.f32 %v513_v22  ;;  %v509_v25 = vmul.f32 0.015625, %v501_v24 }
 0x13c   : > { %v2811_v26 = vpop.eup %2810  ;;  %2822 = vrsqrt.f32 %v516_v23 }
 0x13d   : > { %v517_v27 = vadd.f32 1e-05, %v509_v25  ;;  %v526_v30 = vmul.f32 %v2811_v26, %v3075_v20 }
 0x13f   : > { %2824 = vrsqrt.f32 %v517_v27  ;;  %v540_v35 = vmul.f32 %v2448_v31, %v526_v30 }
 0x140   : > { %v2813_v32 = vpop.eup %2812 }
 0x141   : > { %v2815_v33 = vpop.eup %2814  ;;  %v527_v34 = vmul.f32 %v2813_v32, %v3083_v28  ;;  %v554_v20 = vadd.f32 %v2449_v36, %v540_v35 }
 0x142   : > { %v530_v37 = vmul.f32 %v2815_v33, %v3077_v21 }
 0x143   : > { %v541_v40 = vmul.f32 %v2448_v31, %v527_v34 }
 0x144   : > { %v2817_v41 = vpop.eup %2816  ;;  %v544_v45 = vmul.f32 %v2448_v31, %v530_v37 }
 0x145   : > { %v2819_v42 = vpop.eup %2818  ;;  %v555_v43 = vadd.f32 %v2449_v36, %v541_v40  ;;  %v531_v44 = vmul.f32 %v2817_v41, %v3085_v29 }
 0x146   : > { %v528_v46 = vmul.f32 %v2819_v42, %v3093_v38  ;;  %v558_v52 = vadd.f32 %v2449_v36, %v544_v45 }
 0x147   : > { %v562_v47 = vpack.c.bf16 %v555_v43, %v554_v20  ;;  %v545_v50 = vmul.f32 %v2448_v31, %v531_v44 }
 0x148   : > { %v2821_v28 = vpop.eup %2820  ;;  %v542_v54 = vmul.f32 %v2448_v31, %v528_v46 }
 0x149   : > { %v2823_v51 = vpop.eup %2822  ;;  %2458 = vmatmul.mubr.msk.bf16.vlgmr.msra.gmra.mxu0 %vm428_vm0, %v562_v47  ;;  %v559_v53 = vadd.f32 %v2449_v36, %v545_v50  ;;  %v529_v21 = vmul.f32 %v2821_v28, %v3095_v39 }
 0x14a   : > { %668 = vmatprep.mubr.bf16.mxu0 %v2968_v63  ;;  %v532_v55 = vmul.f32 %v2823_v51, %v3103_v48  ;;  %v556_v38 = vadd.f32 %v2449_v36, %v542_v54  ;;  %v758_v48 = vlaneseq }
 0x14b   : > { %v564_v56 = vpack.c.bf16 %v559_v53, %v558_v52  ;;  %v543_v29 = vmul.f32 %v2448_v31, %v529_v21 }
 0x14c   : > { %v2825_v57 = vpop.eup %2824  ;;  %v546_v60 = vmul.f32 %v2448_v31, %v532_v55  ;;  %v3161_v2 = vshrl.u32 %v758_v48, 7  ;;  %v3172_v5 = vand.u32 127, %v758_v48 }
 0x14d   : > { %2460 = vmatmul.mubr.msk.bf16.vlgmr.msra.gmra.mxu1 %vm428_vm0, %v564_v56  ;;  %v557_v58 = vadd.f32 %v2449_v36, %v543_v29  ;;  %v533_v59 = vmul.f32 %v2825_v57, %v3105_v49 }
 0x14e   : > { %688 = vmatprep.mubr.bf16.mxu1 %v2968_v63  ;;  %v560_v39 = vadd.f32 %v2449_v36, %v546_v60  ;;  %v3164_v3 = vadd.s32 8, %v3161_v2  ;;  %v3167_v49 = vadd.s32 16, %v3161_v2  ;;  %v3170_v4 = vadd.s32 24, %v3161_v2 }
 0x14f   : > { %v563_v61 = vpack.c.bf16 %v557_v58, %v556_v38  ;;  %v547_v62 = vmul.f32 %v2448_v31, %v533_v59  ;;  %vm765_vm1 = vcmp.ge.s32.totalorder %v3161_v2, %v3172_v5 }
 0x150   : > { %vm766_vm2 = vcmp.ge.s32.totalorder %v3164_v3, %v3172_v5  ;;  %vm767_vm3 = vcmp.ge.s32.totalorder %v3167_v49, %v3172_v5  ;;  %vm768_vm4 = vcmp.ge.s32.totalorder %v3170_v4, %v3172_v5 }
 0x151   : > { %2459 = vmatmul.mubr.msk.bf16.gmra.mxu0 %vm428_vm0, %v563_v61  ;;  %v561_v0 = vadd.f32 %v2449_v36, %v547_v62 }
 0x153   : > { %v565_v1 = vpack.c.bf16 %v561_v0, %v560_v39 }
 0x155   : > { %2461 = vmatmul.mubr.msk.bf16.gmra.mxu1 %vm428_vm0, %v565_v1 }
 0x209   : > { %v660_v15 = vpop.f32.mrf.mxu0 }
 0x20b   : > { %v662_v16 = vpop.f32.mrf.mxu0 }
 0x20c   : > { %v2563_v18 = vpack.c.bf16 %v662_v16, %v660_v15 }
 0x20d   : > { %v664_v19 = vpop.f32.mrf.mxu0  ;;  %v680_v22 = vpop.f32.mrf.mxu1 }
 0x20e   : > { %750 = vst.msk [vmem:[#allocation2] sm:$0xff] %vm3227_vm7, %v2563_v18 }
 0x20f   : > { %v666_v23 = vpop.f32.mrf.mxu0  ;;  %v682_v24 = vpop.f32.mrf.mxu1 }
 0x210   : > { %v2564_v25 = vpack.c.bf16 %v666_v23, %v664_v19  ;;  %v2567_v26 = vpack.c.bf16 %v682_v24, %v680_v22 }
 0x211   : > { %v670_v27 = vpop.f32.mrf.mxu0  ;;  %v684_v30 = vpop.f32.mrf.mxu1 }
 0x212   : > { %751 = vst.msk [vmem:[#allocation2 + $0x8] sm:$0xff] %vm3227_vm7, %v2564_v25  ;;  %754 = vst.msk [vmem:[#allocation2 + $0x20] sm:$0xff] %vm3227_vm7, %v2567_v26 }
 0x213   : > { %v672_v31 = vpop.f32.mrf.mxu0  ;;  %v686_v32 = vpop.f32.mrf.mxu1 }
 0x214   : > { %v2565_v33 = vpack.c.bf16 %v672_v31, %v670_v27  ;;  %v2568_v34 = vpack.c.bf16 %v686_v32, %v684_v30 }
 0x215   : > { %v674_v35 = vpop.f32.mrf.mxu0  ;;  %v690_v36 = vpop.f32.mrf.mxu1 }
 0x216   : > { %752 = vst.msk [vmem:[#allocation2 + $0x10] sm:$0xff] %vm3227_vm7, %v2565_v33  ;;  %755 = vst.msk [vmem:[#allocation2 + $0x28] sm:$0xff] %vm3227_vm7, %v2568_v34 }
 0x217   : > { %v676_v37 = vpop.f32.mrf.mxu0  ;;  %v692_v40 = vpop.f32.mrf.mxu1 }
 0x218   : > { %v2566_v41 = vpack.c.bf16 %v676_v37, %v674_v35  ;;  %v2569_v42 = vpack.c.bf16 %v692_v40, %v690_v36 }
 0x219   : > { %v694_v20 = vpop.f32.mrf.mxu1 }
 0x21a   : > { %753 = vst.msk [vmem:[#allocation2 + $0x18] sm:$0xff] %vm3227_vm7, %v2566_v41  ;;  %756 = vst.msk [vmem:[#allocation2 + $0x30] sm:$0xff] %vm3227_vm7, %v2569_v42 }
 0x21b   : > { %v696_v43 = vpop.f32.mrf.mxu1 }
 0x21c   : > { %v2570_v44 = vpack.c.bf16 %v696_v43, %v694_v20 }
 0x21e   : > { %757 = vst.msk [vmem:[#allocation2 + $0x38] sm:$0xff] %vm3227_vm7, %v2570_v44 }
 0x21f LB: >> { %s3253_s23 = sshll.u32 %s2966_s22, 5  ;;  %vm812_vm8 = vcmask 130048   ;;  %s2969_s25 = smov 64   ;;  %vm878_vm9 = vcmask 261120   ;;  %vm1008_vm10 = vcmask 125952   ;;  %vm1245_vm11 = vcmask 257152   ;;  %s2966_s22 = sphi %s3247_s22, %s783_s22  }
 0x220   : >> { %s3256_s24 = scalar_lea.vmem [#allocation2], %s3253_s23  ;;  %s2970_s26 = smov 48   ;;  %vm1482_vm12 = vcmask 388352   ;;  %vm1719_vm13 = vcmask 519552  }
 0x221   : >> { %s2971_s28 = smov 112   ;;  %s2972_s29 = smov 32  }
 0x222   : >> { %s2973_s13 = smov 96   ;;  %s2974_s14 = smov 16  }
 0x223   : >> { %s2975_s15 = smov 80   ;;  %s1817_s16 = scalar_lea.vmem %s3052_s27, %s3253_s23 }
 0x224   : >> { %s1836_s17 = scalar_lea.vmem [#allocation3], %s3253_s23  ;;  %s783_s22 = sadd.s32 1, %s2966_s22  }
 0x225   : >> { %v2826_v45 = vld [vmem:[%s3256_s24 + $0x10] ss:$8 sps:$4 sm:$0xff]   ;;  %v2827_v46 = vld [vmem:[%s3256_s24] ss:$8 sps:$4 sm:$0xff]   ;;  %v2832_v53 = vld [vmem:[%s3256_s24 + $0x14] ss:$8 sps:$4 sm:$0xff]  }
 0x226   : >> { %810 = vrot.lane.b32.xlu0 %v2826_v45, %s2969_s25  ;;  %2670 = vmatprep.mubr.msk.bf16.mxu0 %vm812_vm8, %v2827_v46  ;;  %v2828_v47 = vld [vmem:[%s3256_s24 + $0x10] ss:$8 sps:$4 sm:$0xff]   ;;  %v2833_v21 = vld [vmem:[%s3256_s24 + $0x4] ss:$8 sps:$4 sm:$0xff]   ;;  %v2829_v1 = vld [vmem:[%s3256_s24] ss:$8 sps:$4 sm:$0xff]  }
 0x227   : >> { %1037 = vrot.lane.b32.xlu1 %v2828_v47, %s2970_s26  ;;  %2674 = vmatprep.subr.bf16.mxu1 %v2832_v53  ;;  %v2830_v48 = vld [vmem:[%s3256_s24 + $0x10] ss:$8 sps:$4 sm:$0xff]   ;;  %v2831_v15 = vld [vmem:[%s3256_s24] ss:$8 sps:$4 sm:$0xff]   ;;  %v2834_v16 = vld [vmem:[%s3256_s24 + $0x14] ss:$8 sps:$4 sm:$0xff]  }
 0x228   : >> { %2675 = vmatpush3.bf16.msra.mxu1 %v2832_v53  ;;  %p780_p4 = scmp.ge.s32.totalorder %s783_s22, 2  }
 0x229   : >> { %2676 = vmatprep.subr.bf16.mxu1 %v2833_v21 }
 0x22a   : >> { %808 = vrot.lane.b32.xlu0 %v2827_v46, %s2969_s25 }
 0x22c   : >> { %2677 = vmatpush3.bf16.msra.mxu1 %v2833_v21 }
 0x298   : >> { %v811_v50 = vpop.permute.xlu0 %810 }
 0x299   : >> { %2766 = vmatprep.subr.msk.bf16.mxu0 %vm812_vm8, %v811_v50  ;;  %v823_v28 = vsel %vm812_vm8, %v811_v50, 0  ;;  %v3270_v54 = vpop.permute.xlu1 %1037 }
 0x29a   : >> { %2667 = vmatpush3.bf16.xpose.msra.mxu0 %v823_v28  ;;  %2768 = vmatprep.subr.msk.bf16.mxu1 %vm812_vm8, %v3270_v54 }
 0x29c   : >> { %v809_v51 = vpop.permute.xlu0 %808 }
 0x29d   : >> { %2767 = vmatprep.subr.msk.bf16.mxu0 %vm812_vm8, %v809_v51  ;;  %v820_v52 = vsel %vm812_vm8, %v809_v51, 0 }
 0x2a2   : >> { %2669 = vmatpush3.bf16.xpose.msra.mxu0 %v820_v52 }
 0x2a9   : >> { %2671 = vmatmul.mubr.msk.bf16.vlgmr.msra.gmra.mxu0 %vm812_vm8, %v2826_v45 }
 0x369   : >> { %v2672_v55 = vpop.f32.mrf.mxu0 }
 0x36a   : >> { %v876_v56 = vsel %vm767_vm3, %v2672_v55, -1e+30 }
 0x36b   : >> { %v859_v29 = vpop.f32.mrf.mxu0  ;;  %v885_v57 = vsel %vm878_vm9, %v876_v56, -inf }
 0x36c   : >> { %v874_v38 = vsel %vm765_vm1, %v859_v29, -1e+30  ;;  %886 = vmax.xlane.f32.xlu0 %v885_v57 }
 0x36d   : >> { %v2673_v58 = vpop.f32.mrf.mxu0  ;;  %v879_v59 = vsel %vm878_vm9, %v874_v38, -inf }
 0x36e   : >> { %v877_v60 = vsel %vm768_vm4, %v2673_v58, -1e+30  ;;  %880 = vmax.xlane.f32.xlu1 %v879_v59 }
 0x36f   : >> { %v862_v61 = vpop.f32.mrf.mxu0  ;;  %v888_v62 = vsel %vm878_vm9, %v877_v60, -inf }
 0x370   : >> { %v875_v39 = vsel %vm766_vm2, %v862_v61, -1e+30 }
 0x371   : >> { %v882_v0 = vsel %vm878_vm9, %v875_v39, -inf }
 0x372   : >> { %889 = vmax.xlane.f32.xlu1 %v888_v62 }
 0x376   : >> { %883 = vmax.xlane.f32.xlu1 %v882_v0 }
 0x382   : >> { %1033 = vrot.lane.b32.xlu0 %v2828_v47, %s2971_s28  ;;  %v1049_v47 = vsel %vm812_vm8, %v3270_v54, 0 }
 0x387   : >> { %1035 = vrot.lane.b32.xlu1 %v2829_v1, %s2970_s26 }
 0x38b   : >> { %1274 = vrot.lane.b32.xlu1 %v2830_v48, %s2972_s29 }
 0x38f   : >> { %1031 = vrot.lane.b32.xlu1 %v2829_v1, %s2971_s28 }
 0x393   : >> { %1272 = vrot.lane.b32.xlu1 %v2831_v15, %s2972_s29 }
 0x397   : >> { %1268 = vrot.lane.b32.xlu1 %v2831_v15, %s2973_s13 }
 0x39b   : >> { %1270 = vrot.lane.b32.xlu1 %v2830_v48, %s2973_s13 }
 0x39f   : >> { %1154 = vrot.lane.b32.xlu1 %v2834_v16, %s2971_s28 }
 0x3f5   : >> { %v887_v18 = vpop.xlane.xlu0 %886 }
 0x3f6   : >> { %v893_v24 = vsub.f32 %v876_v56, %v887_v18 }
 0x3f7   : >> { %v881_v17 = vpop.xlane.xlu1 %880 }
 0x3f8   : >> { %v891_v19 = vsub.f32 %v874_v38, %v881_v17  ;;  %v899_v31 = vmul.f32 1.442695, %v893_v24 }
 0x3f9   : >> { %v1034_v51 = vpop.permute.xlu0 %1033 }
 0x3fa   : >> { %v895_v25 = vmul.f32 1.442695, %v891_v19 }
 0x3fb   : >> { %v890_v22 = vpop.xlane.xlu1 %889 }
 0x3fc   : >> { %v894_v23 = vsub.f32 %v877_v60, %v890_v22  ;;  %2844 = vpow2.f32 %v895_v25 }
 0x3fe   : >> { %v901_v26 = vmul.f32 1.442695, %v894_v23 }
 0x3ff   : >> { %v884_v27 = vpop.xlane.xlu1 %883 }
 0x400   : >> { %v892_v30 = vsub.f32 %v875_v39, %v884_v27  ;;  %2846 = vpow2.f32 %v901_v26 }
 0x402   : >> { %v897_v32 = vmul.f32 1.442695, %v892_v30  ;;  %v2836_v30 = vld [vmem:[%s3256_s24 + $0x14] ss:$8 sps:$4 sm:$0xff]  }
 0x403   : >> { %v1036_v33 = vpop.permute.xlu1 %1035 }
 0x404   : >> { %2848 = vpow2.f32 %v897_v32  ;;  %v1046_v28 = vsel %vm812_vm8, %v1036_v33, 0  ;;  %v2839_v32 = vld [vmem:[%s3256_s24] ss:$8 sps:$4 sm:$0xff]  }
 0x405   : >> { %2850 = vpow2.f32 %v899_v31  ;;  %v2837_v31 = vld [vmem:[%s3256_s24 + $0x4] ss:$8 sps:$4 sm:$0xff]  }
 0x407   : >> { %v1275_v34 = vpop.permute.xlu1 %1274 }
 0x408   : >> { %v1286_v35 = vsel %vm812_vm8, %v1275_v34, 0  ;;  %2770 = vmatprep.subr.msk.bf16.mxu0 %vm812_vm8, %v1275_v34  ;;  %v2838_v34 = vld [vmem:[%s3256_s24 + $0x10] ss:$8 sps:$4 sm:$0xff]  }
 0x409   : >> { %2699 = vmatpush3.bf16.xpose.msra.mxu0 %v1286_v35  ;;  %v3304_v37 = vpop.eup %2844 }
 0x40b   : >> { %v1032_v36 = vpop.permute.xlu1 %1031 }
 0x40d   : >> { %v3306_v41 = vpop.eup %2846 }
 0x40f   : >> { %v1273_v40 = vpop.permute.xlu1 %1272 }
 0x410   : >> { %v1283_v42 = vsel %vm812_vm8, %v1273_v40, 0  ;;  %2771 = vmatprep.subr.msk.bf16.mxu0 %vm812_vm8, %v1273_v40 }
 0x411   : >> { %v3310_v20 = vpop.eup %2848  ;;  %2701 = vmatpush3.bf16.xpose.msra.mxu0 %v1283_v42 }
 0x412   : >> { %v3312_v43 = vpop.eup %2850  ;;  %v915_v44 = vpack.c.bf16 %v3310_v20, %v3304_v37 }
 0x413   : >> { %v1269_v45 = vpop.permute.xlu1 %1268  ;;  %v916_v46 = vpack.c.bf16 %v3306_v41, %v3312_v43 }
 0x414   : >> { %2678 = vmatprep.mubr.msk.bf16.mxu1 %vm878_vm9, %v915_v44  ;;  %2702 = vmatprep.mubr.msk.bf16.mxu0 %vm812_vm8, %v1269_v45 }
 0x415   : >> { %2679 = vmatmul.mubr.msk.bf16.vlgmr.msra.gmra.mxu1 %vm878_vm9, %v916_v46 }
 0x416   : >> { %2683 = vmatpush3.bf16.xpose.msra.mxu1 %v1049_v47  ;;  %2686 = vmatprep.mubr.msk.bf16.mxu1 %vm812_vm8, %v1032_v36 }
 0x417   : >> { %2769 = vmatprep.subr.msk.bf16.mxu1 %vm812_vm8, %v1036_v33  ;;  %v1271_v50 = vpop.permute.xlu1 %1270  ;;  %v2835_v33 = vld [vmem:[%s3256_s24 + $0x4] ss:$8 sps:$4 sm:$0xff]  }
 0x418   : >> { %2703 = vmatmul.mubr.msk.bf16.vlgmr.msra.gmra.mxu0 %vm812_vm8, %v1271_v50 }
 0x41b   : >> { %v1155_v52 = vpop.permute.xlu1 %1154 }
 0x41e   : >> { %2685 = vmatpush3.bf16.xpose.msra.mxu1 %v1046_v28 }
 0x41f   : >> { %2690 = vmatprep.subr.bf16.mxu1 %v1155_v52 }
 0x425   : >> { %2687 = vmatmul.mubr.msk.bf16.vlgmr.msra.gmra.mxu1 %vm812_vm8, %v1034_v51 }
 0x426   : >> { %2691 = vmatpush3.bf16.msra.mxu1 %v1155_v52 }
 0x4d5   : >> { %v3328_v53 = vpop.f32.mrf.mxu1 }
 0x4d7   : >> { %v3337_v29 = vpop.f32.mrf.mxu1 }
 0x4d8   : >> { %v2704_v21 = vpop.f32.mrf.mxu0 }
 0x4d9   : >> { %v3333_v54 = vsel %vm767_vm3, %v2704_v21, -1e+30  ;;  %v3353_v62 = vpop.f32.mrf.mxu1 }
 0x4da   : >> { %v1322_v55 = vpop.f32.mrf.mxu0  ;;  %v1347_v56 = vsel %vm878_vm9, %v3333_v54, -inf }
 0x4db   : >> { %v3342_v57 = vsel %vm765_vm1, %v1322_v55, -1e+30  ;;  %1348 = vmax.xlane.f32.xlu1 %v1347_v56  ;;  %v3359_v1 = vpop.f32.mrf.mxu1 }
 0x4dc   : >> { %v2705_v38 = vpop.f32.mrf.mxu0  ;;  %v1341_v58 = vsel %vm878_vm9, %v3342_v57, -inf }
 0x4dd   : >> { %v3349_v59 = vsel %vm768_vm4, %v2705_v38, -1e+30 }
 0x4de   : >> { %v1325_v60 = vpop.f32.mrf.mxu0  ;;  %v1350_v61 = vsel %vm878_vm9, %v3349_v59, -inf }
 0x4df   : >> { %v1338_v39 = vsel %vm766_vm2, %v1325_v60, -1e+30  ;;  %1342 = vmax.xlane.f32.xlu1 %v1341_v58  ;;  %1351 = vmax.xlane.f32.xlu0 %v1350_v61 }
 0x4e0   : >> { %v1344_v0 = vsel %vm878_vm9, %v1338_v39, -inf }
 0x4e3   : >> { %1345 = vmax.xlane.f32.xlu0 %v1344_v0 }
 0x4e5   : >> { %v2688_v48 = vpop.f32.mrf.mxu1 }
 0x4e6   : >> { %v1102_v15 = vsel %vm767_vm3, %v2688_v48, -1e+30 }
 0x4e7   : >> { %v1085_v16 = vpop.f32.mrf.mxu1  ;;  %v1110_v17 = vsel %vm878_vm9, %v1102_v15, -inf }
 0x4e8   : >> { %v1100_v18 = vsel %vm765_vm1, %v1085_v16, -1e+30  ;;  %1111 = vmax.xlane.f32.xlu1 %v1110_v17 }
 0x4e9   : >> { %v2689_v19 = vpop.f32.mrf.mxu1  ;;  %v1104_v24 = vsel %vm878_vm9, %v1100_v18, -inf }
 0x4ea   : >> { %v1103_v22 = vsel %vm768_vm4, %v2689_v19, -1e+30 }
 0x4eb   : >> { %v1088_v23 = vpop.f32.mrf.mxu1  ;;  %v1113_v25 = vsel %vm878_vm9, %v1103_v22, -inf }
 0x4ec   : >> { %v1101_v26 = vsel %vm766_vm2, %v1088_v23, -1e+30  ;;  %1105 = vmax.xlane.f32.xlu1 %v1104_v24  ;;  %1114 = vmax.xlane.f32.xlu0 %v1113_v25 }
 0x4ed   : >> { %v1107_v27 = vsel %vm878_vm9, %v1101_v26, -inf }
 0x4f0   : >> { %1108 = vmax.xlane.f32.xlu0 %v1107_v27 }
 0x4fd   : >> { %1391 = vrot.lane.b32.xlu1 %v2836_v30, %s2973_s13 }
 0x501   : >> { %1389 = vrot.lane.b32.xlu1 %v2837_v31, %s2973_s13 }
 0x505   : >> { %1509 = vrot.lane.b32.xlu1 %v2839_v32, %s2974_s14 }
 0x506   : >> { %1152 = vrot.lane.b32.xlu0 %v2835_v33, %s2971_s28 }
 0x509   : >> { %1507 = vrot.lane.b32.xlu1 %v2838_v34, %s2975_s15 }
 0x50a   : >> { %1511 = vrot.lane.b32.xlu0 %v2838_v34, %s2974_s14 }
 0x50e   : >> { %1505 = vrot.lane.b32.xlu0 %v2839_v32, %s2975_s15 }
 0x564   : >> { %v1349_v35 = vpop.xlane.xlu1 %1348 }
 0x568   : >> { %v1352_v36 = vpop.xlane.xlu0 %1351  ;;  %v1343_v40 = vpop.xlane.xlu1 %1342 }
 0x569   : >> { %v1353_v21 = vsub.f32 %v3342_v57, %v1343_v40  ;;  %v1356_v48 = vsub.f32 %v3349_v59, %v1352_v36 }
 0x56b   : >> { %v1357_v61 = vmul.f32 1.442695, %v1353_v21  ;;  %v1363_v57 = vmul.f32 1.442695, %v1356_v48 }
 0x56c   : >> { %v1346_v42 = vpop.xlane.xlu0 %1345 }
 0x56d   : >> { %v1354_v45 = vsub.f32 %v1338_v39, %v1346_v42 }
 0x56f   : >> { %v1359_v51 = vmul.f32 1.442695, %v1354_v45 }
 0x571   : >> { %v1112_v44 = vpop.xlane.xlu1 %1111  ;;  %2852 = vpow2.f32 %v1359_v51 }
 0x572   : >> { %v1118_v52 = vsub.f32 %v1102_v15, %v1112_v44  ;;  %v1355_v15 = vsub.f32 %v3333_v54, %v1349_v35 }
 0x574   : >> { %v1124_v60 = vmul.f32 1.442695, %v1118_v52  ;;  %v1361_v17 = vmul.f32 1.442695, %v1355_v15 }
 0x575   : >> { %v1115_v46 = vpop.xlane.xlu0 %1114  ;;  %v1106_v47 = vpop.xlane.xlu1 %1105 }
 0x576   : >> { %v1119_v50 = vsub.f32 %v1103_v22, %v1115_v46  ;;  %v1116_v28 = vsub.f32 %v1100_v18, %v1106_v47 }
 0x578   : >> { %v1126_v55 = vmul.f32 1.442695, %v1119_v50  ;;  %v1120_v56 = vmul.f32 1.442695, %v1116_v28 }
 0x579   : >> { %v1109_v38 = vpop.xlane.xlu0 %1108  ;;  %v1392_v16 = vpop.permute.xlu1 %1391 }
 0x57a   : >> { %v1117_v58 = vsub.f32 %v1101_v26, %v1109_v38  ;;  %2854 = vpow2.f32 %v1126_v55 }
 0x57b   : >> { %2856 = vpow2.f32 %v1120_v56 }
 0x57c   : >> { %v1122_v0 = vmul.f32 1.442695, %v1117_v58 }
 0x57d   : >> { %v1153_v39 = vpop.permute.xlu0 %1152  ;;  %v1390_v27 = vpop.permute.xlu1 %1389 }
 0x57e   : >> { %2858 = vpow2.f32 %v1122_v0  ;;  %2692 = vmatprep.subr.bf16.mxu1 %v1153_v39  ;;  %v3392_v18 = vpop.eup %2852 }
 0x57f   : >> { %2860 = vpow2.f32 %v1124_v60  ;;  %2693 = vmatpush3.bf16.msra.mxu1 %v1153_v39 }
 0x580   : >> { %2862 = vpow2.f32 %v1357_v61  ;;  %2706 = vmatprep.subr.bf16.mxu1 %v1392_v16 }
 0x581   : >> { %2864 = vpow2.f32 %v1363_v57  ;;  %v1512_v30 = vpop.permute.xlu0 %1511  ;;  %v1510_v36 = vpop.permute.xlu1 %1509  ;;  %v2840_v57 = vld [vmem:[%s3256_s24 + $0x14] ss:$8 sps:$4 sm:$0xff]  }
 0x582   : >> { %2866 = vpow2.f32 %v1361_v17  ;;  %v1523_v33 = vsel %vm812_vm8, %v1512_v30, 0  ;;  %v1520_v40 = vsel %vm812_vm8, %v1510_v36, 0  ;;  %v2841_v17 = vld [vmem:[%s3256_s24 + $0x4] ss:$8 sps:$4 sm:$0xff]  }
 0x585   : >> { %v1506_v35 = vpop.permute.xlu0 %1505  ;;  %v1508_v42 = vpop.permute.xlu1 %1507 }
 0x587   : >> { %v3394_v19 = vpop.eup %2854 }
 0x588   : >> { %v2857_v59 = vpop.eup %2856 }
 0x58b   : >> { %v2859_v22 = vpop.eup %2858 }
 0x58c   : >> { %v2861_v23 = vpop.eup %2860  ;;  %v1140_v24 = vpack.c.bf16 %v2859_v22, %v2857_v59 }
 0x58d   : >> { %v2863_v25 = vpop.eup %2862  ;;  %v1141_v26 = vpack.c.bf16 %v3394_v19, %v2861_v23 }
 0x58e   : >> { %2694 = vmatprep.mubr.msk.bf16.mxu1 %vm878_vm9, %v1140_v24  ;;  %v1377_v54 = vpack.c.bf16 %v3392_v18, %v2863_v25  ;;  %v2865_v31 = vpop.eup %2864  ;;  %v1128_v24 = vsel %vm878_vm9, %v2857_v59, 0.0 }
 0x58f   : >> { %2695 = vmatmul.mubr.msk.bf16.vlgmr.msra.gmra.mxu1 %vm878_vm9, %v1141_v26  ;;  %v2867_v32 = vpop.eup %2866  ;;  %v1131_v26 = vsel %vm878_vm9, %v2859_v22, 0.0  ;;  %v1374_v22 = vsel %vm878_vm9, %v2865_v31, 0.0 }
 0x590   : >> { %2707 = vmatpush3.bf16.msra.mxu1 %v1392_v16  ;;  %2710 = vmatprep.mubr.msk.bf16.mxu1 %vm878_vm9, %v1377_v54  ;;  %v1378_v34 = vpack.c.bf16 %v2865_v31, %v2867_v32  ;;  %v1134_v54 = vsel %vm878_vm9, %v2861_v23, 0.0  ;;  %v1371_v59 = vsel %vm878_vm9, %v2867_v32, 0.0 }
 0x591   : >> { %2708 = vmatprep.subr.bf16.mxu1 %v1390_v27 }
 0x594   : >> { %2709 = vmatpush3.bf16.msra.mxu1 %v1390_v27  ;;  %v1137_v27 = vsel %vm878_vm9, %v3394_v19, 0.0 }
 0x595   : >> { %2772 = vmatprep.subr.msk.bf16.mxu1 %vm812_vm8, %v1512_v30  ;;  %v1365_v30 = vsel %vm878_vm9, %v2863_v25, 0.0 }
 0x597   : >> { %2711 = vmatmul.mubr.msk.bf16.vlgmr.msra.gmra.mxu1 %vm878_vm9, %v1378_v34 }
 0x598   : >> { %2715 = vmatpush3.bf16.xpose.msra.mxu1 %v1523_v33  ;;  %2718 = vmatprep.mubr.msk.bf16.mxu1 %vm812_vm8, %v1506_v35  ;;  %v1368_v33 = vsel %vm878_vm9, %v3392_v18, 0.0 }
 0x599   : >> { %2773 = vmatprep.subr.msk.bf16.mxu1 %vm812_vm8, %v1510_v36 }
 0x5a0   : >> { %2717 = vmatpush3.bf16.xpose.msra.mxu1 %v1520_v40 }
 0x5a7   : >> { %2719 = vmatmul.mubr.msk.bf16.vlgmr.msra.gmra.mxu1 %vm812_vm8, %v1508_v42 }
 0x64f   : >> { %v3408_v44 = vpop.f32.mrf.mxu1 }
 0x651   : >> { %v3410_v45 = vpop.f32.mrf.mxu1 }
 0x653   : >> { %v3412_v46 = vpop.f32.mrf.mxu1 }
 0x655   : >> { %v3414_v47 = vpop.f32.mrf.mxu1 }
 0x657   : >> { %v3416_v50 = vpop.f32.mrf.mxu1 }
 0x659   : >> { %v3418_v28 = vpop.f32.mrf.mxu1 }
 0x65b   : >> { %v3420_v51 = vpop.f32.mrf.mxu1 }
 0x65d   : >> { %v3422_v52 = vpop.f32.mrf.mxu1 }
 0x667   : >> { %v2720_v21 = vpop.f32.mrf.mxu1 }
 0x668   : >> { %v1576_v55 = vsel %vm767_vm3, %v2720_v21, -1e+30 }
 0x669   : >> { %v1559_v56 = vpop.f32.mrf.mxu1  ;;  %v1584_v38 = vsel %vm878_vm9, %v1576_v55, -inf }
 0x66a   : >> { %v1574_v58 = vsel %vm765_vm1, %v1559_v56, -1e+30  ;;  %1585 = vmax.xlane.f32.xlu0 %v1584_v38 }
 0x66b   : >> { %v2721_v60 = vpop.f32.mrf.mxu1  ;;  %v1578_v0 = vsel %vm878_vm9, %v1574_v58, -inf }
 0x66c   : >> { %v1577_v48 = vsel %vm768_vm4, %v2721_v60, -1e+30 }
 0x66d   : >> { %v1562_v61 = vpop.f32.mrf.mxu1  ;;  %v1587_v15 = vsel %vm878_vm9, %v1577_v48, -inf }
 0x66e   : >> { %v1575_v39 = vsel %vm766_vm2, %v1562_v61, -1e+30  ;;  %1579 = vmax.xlane.f32.xlu0 %v1578_v0 }
 0x66f   : >> { %v1581_v16 = vsel %vm878_vm9, %v1575_v39, -inf }
 0x670   : >> { %1582 = vmax.xlane.f32.xlu1 %v1581_v16 }
 0x672   : >> { %1588 = vmax.xlane.f32.xlu0 %v1587_v15 }
 0x681   : >> { %1628 = vrot.lane.b32.xlu1 %v2840_v57, %s2975_s15 }
 0x688   : >> { %1626 = vrot.lane.b32.xlu0 %v2841_v17, %s2975_s15  ;;  %v903_v17 = vsel %vm878_vm9, %v3304_v37, 0.0 }
 0x6a5   : >> { %1129 = vadd.xlane.f32.xlu1 %v1128_v24  ;;  %v906_v24 = vsel %vm878_vm9, %v3310_v20, 0.0 }
 0x6a7   : >> { %1132 = vadd.xlane.f32.xlu0 %v1131_v26  ;;  %v909_v26 = vsel %vm878_vm9, %v3312_v43, 0.0 }
 0x6a9   : >> { %1135 = vadd.xlane.f32.xlu1 %v1134_v54  ;;  %v912_v54 = vsel %vm878_vm9, %v3306_v41, 0.0 }
 0x6ab   : >> { %1138 = vadd.xlane.f32.xlu0 %v1137_v27 }
 0x6ad   : >> { %1366 = vadd.xlane.f32.xlu1 %v1365_v30 }
 0x6af   : >> { %1369 = vadd.xlane.f32.xlu0 %v1368_v33 }
 0x6b1   : >> { %1372 = vadd.xlane.f32.xlu1 %v1371_v59 }
 0x6b3   : >> { %1375 = vadd.xlane.f32.xlu0 %v1374_v22 }
 0x6f3   : >> { %v1586_v34 = vpop.xlane.xlu0 %1585 }
 0x6f4   : >> { %v1592_v23 = vsub.f32 %v1576_v55, %v1586_v34 }
 0x6f6   : >> { %v1598_v40 = vmul.f32 1.442695, %v1592_v23 }
 0x6f7   : >> { %v1580_v35 = vpop.xlane.xlu0 %1579 }
 0x6f8   : >> { %v1590_v36 = vsub.f32 %v1574_v58, %v1580_v35 }
 0x6f9   : >> { %v1583_v19 = vpop.xlane.xlu1 %1582 }
 0x6fa   : >> { %v1594_v42 = vmul.f32 1.442695, %v1590_v36  ;;  %v1591_v21 = vsub.f32 %v1575_v39, %v1583_v19 }
 0x6fb   : >> { %v1589_v25 = vpop.xlane.xlu0 %1588 }
 0x6fc   : >> { %2868 = vpow2.f32 %v1594_v42  ;;  %v1596_v56 = vmul.f32 1.442695, %v1591_v21  ;;  %v1593_v38 = vsub.f32 %v1577_v48, %v1589_v25 }
 0x6fd   : >> { %2870 = vpow2.f32 %v1598_v40  ;;  %v1629_v18 = vpop.permute.xlu1 %1628 }
 0x6fe   : >> { %2872 = vpow2.f32 %v1596_v56  ;;  %v1600_v32 = vmul.f32 1.442695, %v1593_v38  ;;  %2722 = vmatprep.subr.bf16.mxu0 %v1629_v18 }
 0x6ff   : >> { %2723 = vmatpush3.bf16.msra.mxu0 %v1629_v18  ;;  %v1627_v31 = vpop.permute.xlu0 %1626 }
 0x700   : >> { %2874 = vpow2.f32 %v1600_v32  ;;  %2724 = vmatprep.subr.bf16.mxu0 %v1627_v31 }
 0x703   : >> { %2725 = vmatpush3.bf16.msra.mxu0 %v1627_v31 }
 0x709   : >> { %v2869_v55 = vpop.eup %2868 }
 0x70a   : >> { %v2871_v58 = vpop.eup %2870  ;;  %v1602_v60 = vsel %vm878_vm9, %v2869_v55, 0.0 }
 0x70b   : >> { %v2873_v61 = vpop.eup %2872  ;;  %1603 = vadd.xlane.f32.xlu1 %v1602_v60  ;;  %v1608_v16 = vsel %vm878_vm9, %v2871_v58, 0.0 }
 0x70c   : >> { %v1605_v0 = vsel %vm878_vm9, %v2873_v61, 0.0  ;;  %v1614_v39 = vpack.c.bf16 %v2873_v61, %v2869_v55 }
 0x70d   : >> { %v2875_v48 = vpop.eup %2874  ;;  %1606 = vadd.xlane.f32.xlu0 %v1605_v0 }
 0x70e   : >> { %2726 = vmatprep.mubr.msk.bf16.mxu0 %vm878_vm9, %v1614_v39  ;;  %v1615_v15 = vpack.c.bf16 %v2875_v48, %v2871_v58  ;;  %v1611_v57 = vsel %vm878_vm9, %v2875_v48, 0.0 }
 0x70f   : >> { %1609 = vadd.xlane.f32.xlu1 %v1608_v16 }
 0x710   : >> { %2727 = vmatmul.mubr.msk.bf16.vlgmr.msra.gmra.mxu0 %vm878_vm9, %v1615_v15 }
 0x711   : >> { %1612 = vadd.xlane.f32.xlu0 %v1611_v57 }
 0x713   : >> { %904 = vadd.xlane.f32.xlu1 %v903_v17 }
 0x715   : >> { %907 = vadd.xlane.f32.xlu0 %v906_v24 }
 0x717   : >> { %910 = vadd.xlane.f32.xlu1 %v909_v26 }
 0x719   : >> { %913 = vadd.xlane.f32.xlu0 %v912_v54 }
 0x72e   : >> { %v1130_v27 = vpop.xlane.xlu1 %1129 }
 0x72f   : >> { %2876 = vrcp.f32 %v1130_v27 }
 0x730   : >> { %v1133_v30 = vpop.xlane.xlu0 %1132 }
 0x731   : >> { %2878 = vrcp.f32 %v1133_v30 }
 0x732   : >> { %v1136_v33 = vpop.xlane.xlu1 %1135 }
 0x733   : >> { %2880 = vrcp.f32 %v1136_v33 }
 0x734   : >> { %v1139_v37 = vpop.xlane.xlu0 %1138 }
 0x735   : >> { %2882 = vrcp.f32 %v1139_v37 }
 0x736   : >> { %v1367_v59 = vpop.xlane.xlu1 %1366 }
 0x737   : >> { %2884 = vrcp.f32 %v1367_v59 }
 0x738   : >> { %v1370_v20 = vpop.xlane.xlu0 %1369 }
 0x739   : >> { %2886 = vrcp.f32 %v1370_v20 }
 0x73a   : >> { %v1373_v22 = vpop.xlane.xlu1 %1372 }
 0x73b   : >> { %2888 = vrcp.f32 %v1373_v22 }
 0x73c   : >> { %v2877_v43 = vpop.eup %2876  ;;  %v1376_v34 = vpop.xlane.xlu0 %1375 }
 0x73d   : >> { %2890 = vrcp.f32 %v1376_v34  ;;  %v1217_v41 = vmul.f32 %v2877_v43, %v3410_v45 }
 0x73e   : >> { %v2879_v23 = vpop.eup %2878 }
 0x73f   : >> { %v2576_v35 = vpack.c.bf16 %v1217_v41, %v1217_v41  ;;  %v1218_v36 = vmul.f32 %v2879_v23, %v3414_v47 }
 0x740   : >> { %v2881_v40 = vpop.eup %2880 }
 0x741   : >> { %1233 = vrot.lane.b32.xlu1 %v2576_v35, %s2974_s14  ;;  %v2577_v19 = vpack.c.bf16 %v1218_v36, %v1218_v36  ;;  %v1219_v42 = vmul.f32 %v2881_v40, %v3408_v44  ;;  %v2526_v35 = vcombine.low %v3215_v12, %v3220_v13  ;;  %v2525_v36 = vcombine.low %v3205_v10, %v3210_v11 }
 0x742   : >> { %v2883_v21 = vpop.eup %2882 }
 0x743   : >> { %1235 = vrot.lane.b32.xlu0 %v2577_v19, %s2974_s14  ;;  %v2578_v25 = vpack.c.bf16 %v1219_v42, %v1219_v42  ;;  %v1220_v56 = vmul.f32 %v2883_v21, %v3412_v46  ;;  %2730 = vmatprep.subr.bf16.mxu0 %v2526_v35  ;;  %v2524_v19 = vcombine.low %v3187_v8, %v3200_v9 }
 0x744   : >> { %v2885_v38 = vpop.eup %2884  ;;  %2731 = vmatpush3.bf16.msra.mxu0 %v2526_v35 }
 0x745   : >> { %1237 = vrot.lane.b32.xlu1 %v2578_v25, %s2974_s14  ;;  %v1454_v45 = vmul.f32 %v2885_v38, %v3418_v28  ;;  %v2579_v32 = vpack.c.bf16 %v1220_v56, %v1220_v56  ;;  %2732 = vmatprep.subr.bf16.mxu0 %v2525_v36  ;;  %v2523_v25 = vcombine.low %v3177_v6, %v3182_v7 }
 0x746   : >> { %v2887_v18 = vpop.eup %2886 }
 0x747   : >> { %v2580_v47 = vpack.c.bf16 %v1454_v45, %v1454_v45  ;;  %v1455_v31 = vmul.f32 %v2887_v18, %v3422_v52 }
 0x748   : >> { %v2889_v55 = vpop.eup %2888  ;;  %2733 = vmatpush3.bf16.msra.mxu0 %v2525_v36 }
 0x749   : >> { %1239 = vrot.lane.b32.xlu1 %v2579_v32, %s2974_s14  ;;  %1470 = vrot.lane.b32.xlu0 %v2580_v47, %s2972_s29  ;;  %v1456_v44 = vmul.f32 %v2889_v55, %v3416_v50  ;;  %v2581_v60 = vpack.c.bf16 %v1455_v31, %v1455_v31 }
 0x74a   : >> { %v2891_v58 = vpop.eup %2890  ;;  %2734 = vmatprep.subr.bf16.mxu0 %v2524_v19 }
 0x74b   : >> { %v2582_v46 = vpack.c.bf16 %v1456_v44, %v1456_v44  ;;  %v1457_v61 = vmul.f32 %v2891_v58, %v3420_v51 }
 0x74c   : >> { %2735 = vmatpush3.bf16.msra.mxu0 %v2524_v19 }
 0x74d   : >> { %1472 = vrot.lane.b32.xlu1 %v2581_v60, %s2972_s29  ;;  %1474 = vrot.lane.b32.xlu0 %v2582_v46, %s2972_s29  ;;  %v2583_v28 = vpack.c.bf16 %v1457_v61, %v1457_v61 }
 0x74e   : >> { %2736 = vmatprep.subr.bf16.mxu0 %v2523_v25 }
 0x750   : >> { %2737 = vmatpush3.bf16.msra.mxu0 %v2523_v25 }
 0x751   : >> { %1476 = vrot.lane.b32.xlu1 %v2583_v28, %s2972_s29 }
 0x794   : >> { %v1604_v52 = vpop.xlane.xlu1 %1603 }
 0x796   : >> { %v1607_v0 = vpop.xlane.xlu0 %1606 }
 0x798   : >> { %v1610_v39 = vpop.xlane.xlu1 %1609 }
 0x79a   : >> { %v1613_v48 = vpop.xlane.xlu0 %1612 }
 0x79c   : >> { %v905_v16 = vpop.xlane.xlu1 %904 }
 0x79d   : >> { %2892 = vrcp.f32 %v905_v16 }
 0x79e   : >> { %v908_v15 = vpop.xlane.xlu0 %907 }
 0x79f   : >> { %2894 = vrcp.f32 %v908_v15  ;;  %v1820_v15 = vld [vmem:[%s1817_s16 + $0x10] sm:$0xff] }
 0x7a0   : >> { %v911_v50 = vpop.xlane.xlu1 %910 }
 0x7a1   : >> { %2896 = vrcp.f32 %v911_v50 }
 0x7a2   : >> { %v914_v57 = vpop.xlane.xlu0 %913 }
 0x7a3   : >> { %2898 = vrcp.f32 %v914_v57  ;;  %v1818_v57 = vld [vmem:[%s1817_s16] sm:$0xff] }
 0x7a4   : >> { %2900 = vrcp.f32 %v1604_v52 }
 0x7a5   : >> { %2902 = vrcp.f32 %v1610_v39 }
 0x7a6   : >> { %2904 = vrcp.f32 %v1607_v0 }
 0x7a7   : >> { %2906 = vrcp.f32 %v1613_v48 }
 0x7aa   : >> { %v2893_v51 = vpop.eup %2892 }
 0x7ab   : >> { %v988_v17 = vmul.f32 %v2893_v51, %v3337_v29 }
 0x7ac   : >> { %v2895_v24 = vpop.eup %2894 }
 0x7ad   : >> { %v2572_v26 = vpack.c.bf16 %v988_v17, %v988_v17  ;;  %v989_v54 = vmul.f32 %v2895_v24, %v3359_v1  ;;  %v1821_v24 = vld [vmem:[%s1817_s16 + $0x18] sm:$0xff] }
 0x7ae   : >> { %v2897_v27 = vpop.eup %2896 }
 0x7af   : >> { %1009 = vst.msk [vmem:[#allocation4] sm:$0xf] %vm1008_vm10, %v2572_v26  ;;  %v2573_v30 = vpack.c.bf16 %v989_v54, %v989_v54  ;;  %v990_v33 = vmul.f32 %v2897_v27, %v3328_v53 }
 0x7b0   : >> { %v2899_v37 = vpop.eup %2898 }
 0x7b1   : >> { %1010 = vst.msk [vmem:[#allocation4 + $0x4] sm:$0xf] %vm1008_vm10, %v2573_v30  ;;  %v2574_v59 = vpack.c.bf16 %v990_v33, %v990_v33  ;;  %v991_v20 = vmul.f32 %v2899_v37, %v3353_v62  ;;  %v2901_v42 = vpop.eup %2900  ;;  %v1819_v30 = vld [vmem:[%s1817_s16 + $0x8] sm:$0xff] }
 0x7b2   : >> { %v2903_v38 = vpop.eup %2902 }
 0x7b3   : >> { %v1234_v22 = vpop.permute.xlu1 %1233  ;;  %1011 = vst.msk [vmem:[#allocation4 + $0x8] sm:$0xf] %vm1008_vm10, %v2574_v59  ;;  %v2575_v29 = vpack.c.bf16 %v991_v20, %v991_v20  ;;  %v2905_v47 = vpop.eup %2904 }
 0x7b4   : >> { %1246 = vst.msk [vmem:[#allocation4] sm:$0xf] %vm1245_vm11, %v1234_v22  ;;  %v2907_v44 = vpop.eup %2906 }
 0x7b5   : >> { %v1236_v1 = vpop.permute.xlu0 %1235  ;;  %1012 = vst.msk [vmem:[#allocation4 + $0xc] sm:$0xf] %vm1008_vm10, %v2575_v29 }
 0x7b6   : >> { %1247 = vst.msk [vmem:[#allocation4 + $0x4] sm:$0xf] %vm1245_vm11, %v1236_v1 }
 0x7b7   : >> { %v1238_v43 = vpop.permute.xlu1 %1237 }
 0x7b8   : >> { %1248 = vst.msk [vmem:[#allocation4 + $0x8] sm:$0xf] %vm1245_vm11, %v1238_v43 }
 0x7bb   : >> { %v1471_v53 = vpop.permute.xlu0 %1470  ;;  %v1240_v34 = vpop.permute.xlu1 %1239 }
 0x7bc   : >> { %1483 = vst.msk [vmem:[#allocation4] sm:$0xf] %vm1482_vm12, %v1471_v53 }
 0x7bd   : >> { %1249 = vst.msk [vmem:[#allocation4 + $0xc] sm:$0xf] %vm1245_vm11, %v1240_v34 }
 0x7bf   : >> { %v1475_v62 = vpop.permute.xlu0 %1474  ;;  %v1473_v41 = vpop.permute.xlu1 %1472 }
 0x7c0   : >> { %1485 = vst.msk [vmem:[#allocation4 + $0x8] sm:$0xf] %vm1482_vm12, %v1475_v62  ;;  %1484 = vst.msk [vmem:[#allocation4 + $0x4] sm:$0xf] %vm1482_vm12, %v1473_v41 }
 0x7c3   : >> { %v1477_v23 = vpop.permute.xlu1 %1476 }
 0x7c4   : >> { %1486 = vst.msk [vmem:[#allocation4 + $0xc] sm:$0xf] %vm1482_vm12, %v1477_v23 }
 0x7d0   : >> { %v2728_v40 = vpop.f32.mrf.mxu0 }
 0x7d1   : >> { %v1693_v18 = vmul.f32 %v2903_v38, %v2728_v40 }
 0x7d2   : >> { %v1672_v21 = vpop.f32.mrf.mxu0 }
 0x7d3   : >> { %v1691_v56 = vmul.f32 %v2901_v42, %v1672_v21  ;;  %v2586_v58 = vpack.c.bf16 %v1693_v18, %v1693_v18 }
 0x7d4   : >> { %v2729_v45 = vpop.f32.mrf.mxu0 }
 0x7d5   : >> { %v2584_v32 = vpack.c.bf16 %v1691_v56, %v1691_v56  ;;  %v1694_v60 = vmul.f32 %v2907_v44, %v2729_v45 }
 0x7d6   : >> { %v1675_v31 = vpop.f32.mrf.mxu0 }
 0x7d7   : >> { %v1692_v55 = vmul.f32 %v2905_v47, %v1675_v31  ;;  %1707 = vrot.lane.b32.xlu0 %v2584_v32, %s2970_s26  ;;  %v2587_v61 = vpack.c.bf16 %v1694_v60, %v1694_v60 }
 0x7d9   : >> { %v2585_v46 = vpack.c.bf16 %v1692_v55, %v1692_v55 }
 0x7db   : >> { %1709 = vrot.lane.b32.xlu1 %v2585_v46, %s2970_s26  ;;  %1711 = vrot.lane.b32.xlu0 %v2586_v58, %s2970_s26 }
 0x7df   : >> { %1713 = vrot.lane.b32.xlu1 %v2587_v61, %s2970_s26 }
 0x849   : >> { %v1708_v28 = vpop.permute.xlu0 %1707 }
 0x84a   : >> { %1720 = vst.msk [vmem:[#allocation4] sm:$0xf] %vm1719_vm13, %v1708_v28 }
 0x84d   : >> { %v1712_v52 = vpop.permute.xlu0 %1711  ;;  %v1710_v0 = vpop.permute.xlu1 %1709 }
 0x84e   : >> { %1722 = vst.msk [vmem:[#allocation4 + $0x8] sm:$0xf] %vm1719_vm13, %v1712_v52  ;;  %1721 = vst.msk [vmem:[#allocation4 + $0x4] sm:$0xf] %vm1719_vm13, %v1710_v0 }
 0x851   : >> { %v1714_v39 = vpop.permute.xlu1 %1713 }
 0x852   : >> { %1723 = vst.msk [vmem:[#allocation4 + $0xc] sm:$0xf] %vm1719_vm13, %v1714_v39 }
 0x855   : >> { %v2842_v48 = vld [vmem:[#allocation4] sm:$0xff]  }
 0x856   : >> { %2738 = vmatprep.mubr.msk.bf16.mxu0 %vm428_vm0, %v2842_v48 }
 0x859   : >> { %v2843_v16 = vld [vmem:[#allocation4 + $0x8] sm:$0xff]  }
 0x85a   : >> { %2739 = vmatmul.mubr.msk.bf16.vlgmr.msra.gmra.mxu0 %vm428_vm0, %v2843_v16 }
 0x85b   : > { %2091 = vmatprep.mubr.bf16.mxu0 (%p780_p4), %v2968_v63 }
 0x91a   : >> { %v2740_v50 = vpop.f32.mrf.mxu0 }
 0x91b   : >> { %v1824_v51 = vadd.f32 %v2740_v50, %v1820_v15 }
 0x91c   : >> { %v1802_v17 = vpop.f32.mrf.mxu0 }
 0x91d   : >> { %v1834_v26 = vadd.f32 %v3225_v14, %v1824_v51  ;;  %v1822_v54 = vadd.f32 %v1818_v57, %v1802_v17 }
 0x91e   : >> { %v2741_v27 = vpop.f32.mrf.mxu0 }
 0x91f   : >> { %1839 = vst.msk [vmem:[%s1836_s17 + $0x10] sm:$0xff] %vm428_vm0, %v1834_v26  ;;  %v1832_v33 = vadd.f32 %v3225_v14, %v1822_v54  ;;  %v1825_v37 = vadd.f32 %v2741_v27, %v1821_v24 }
 0x920   : >> { %v1805_v59 = vpop.f32.mrf.mxu0 }
 0x921   : >> { %1837 = vst.msk [vmem:[%s1836_s17] sm:$0xff] %vm428_vm0, %v1832_v33  ;;  %v1835_v20 = vadd.f32 %v3225_v14, %v1825_v37  ;;  %v1823_v22 = vadd.f32 %v1819_v30, %v1805_v59  ;;  %782 = sbr.rel (!%p780_p4) target bundleno = 543 (0x21f), region = 108  ;;  %v2908_v33 = vld [vmem:[%s3777_s8 + $0x34] ss:$8 sps:$4 sm:$0xff] (%p780_p4)   ;;  %v2910_v37 = vld [vmem:[%s3777_s8 + $0x30] ss:$8 sps:$4 sm:$0xff] (%p780_p4)  }
 0x922   : > { %2067 = vmatprep.subr.bf16.mxu0 (%p780_p4), %v2908_v33  ;;  %v2911_v59 = vld [vmem:[%s3777_s8 + $0x24] ss:$8 sps:$4 sm:$0xff] (%p780_p4)  }
 0x923   : >> { %1840 = vst.msk [vmem:[%s1836_s17 + $0x18] sm:$0xff] %vm428_vm0, %v1835_v20  ;;  %v1833_v29 = vadd.f32 %v3225_v14, %v1823_v22  ;;  %2068 = vmatpush1.bf16.msra.mxu0 (%p780_p4), %v2910_v37  ;;  %v2913_v20 = vld [vmem:[%s3777_s8 + $0x20] ss:$8 sps:$4 sm:$0xff] (%p780_p4)   ;;  %v2914_v22 = vld [vmem:[%s3777_s8 + $0x14] ss:$8 sps:$4 sm:$0xff] (%p780_p4)  }
 0x924   : > { %2069 = vmatprep.subr.bf16.mxu0 (%p780_p4), %v2911_v59 }
 0x925   : >> { %1838 = vst.msk [vmem:[%s1836_s17 + $0x8] sm:$0xff] %vm428_vm0, %v1833_v29  ;;  %v2916_v29 = vld [vmem:[%s3777_s8 + $0x10] ss:$8 sps:$4 sm:$0xff] (%p780_p4)  }
 0x927   : > { %2070 = vmatpush1.bf16.msra.mxu0 %v2913_v20  ;;  %v2531_v20 = vld [vmem:[%s3776_s7] ss:$0 sm:$0xff] }
 0x928   : > { %2071 = vmatprep.subr.bf16.mxu0 %v2914_v22 }
 0x92b   : > { %2072 = vmatpush1.bf16.msra.mxu0 %v2916_v29 }
 0x92c   : > { %v3524_v1 = vld [vmem:[#allocation3] sm:$0xff]  ;;  %v3526_v43 = vld [vmem:[#allocation3 + $0x10] sm:$0xff]  ;;  %v3528_v53 = vld [vmem:[#allocation3 + $0x8] sm:$0xff] }
 0x92d   : > { %v1851_v34 = vsel %vm428_vm0, %v3524_v1, 0.0  ;;  %v1857_v62 = vsel %vm428_vm0, %v3526_v43, 0.0  ;;  %v3535_v41 = vld [vmem:[#allocation3 + $0x18] sm:$0xff]  ;;  %v3537_v23 = vld [vmem:[#allocation3 + $0x20] sm:$0xff]  ;;  %v3539_v35 = vld [vmem:[#allocation3 + $0x28] sm:$0xff]  ;;  %v1854_v4 = vsel %vm428_vm0, %v3528_v53, 0.0 }
 0x92e   : > { %1852 = vadd.xlane.f32.xlu0 %v1851_v34  ;;  %1858 = vadd.xlane.f32.xlu1 %v1857_v62  ;;  %v3541_v3 = vld [vmem:[#allocation3 + $0x30] sm:$0xff]  ;;  %v3543_v49 = vld [vmem:[#allocation3 + $0x38] sm:$0xff]  ;;  %v1860_v5 = vsel %vm428_vm0, %v3535_v41, 0.0  ;;  %v1863_v6 = vsel %vm428_vm0, %v3537_v23, 0.0  ;;  %v1866_v7 = vsel %vm428_vm0, %v3539_v35, 0.0 }
 0x92f   : > { %v1869_v8 = vsel %vm428_vm0, %v3541_v3, 0.0  ;;  %v1872_v9 = vsel %vm428_vm0, %v3543_v49, 0.0  ;;  %v2917_v34 = vld [vmem:[%s3777_s8 + $0x4] ss:$8 sps:$4 sm:$0xff]   ;;  %v2919_v62 = vld [vmem:[%s3777_s8] ss:$8 sps:$4 sm:$0xff]  }
 0x930   : > { %2073 = vmatprep.subr.bf16.mxu0 %v2917_v34 }
 0x931   : > { %2074 = vmatpush1.bf16.msra.mxu0 %v2919_v62 }
 0x932   : > { %1855 = vadd.xlane.f32.xlu0 %v1854_v4  ;;  %1861 = vadd.xlane.f32.xlu1 %v1860_v5  ;;  %v2920_v4 = vld [vmem:[%s3779_s10 + $0x78] sm:$0xff]  }
 0x933   : > { %v3635_v5 = vld [vmem:[%s3779_s10 + $0x38] sm:$0xff]   ;;  %2626 = vmatprep.subr.bf16.mxu0 %v2920_v4  ;;  %2750 = vmatprep.subr.bf16.mxu1 %v2920_v4 }
 0x934   : > { %2758 = vmatpush3.bf16.msra.mxu1 %v3635_v5 }
 0x936   : > { %1864 = vadd.xlane.f32.xlu0 %v1863_v6  ;;  %1867 = vadd.xlane.f32.xlu1 %v1866_v7  ;;  %v3640_v6 = vld [vmem:[%s3779_s10 + $0x70] sm:$0xff]  }
 0x937   : > { %2751 = vmatprep.subr.bf16.mxu1 %v3640_v6  ;;  %v3647_v7 = vld [vmem:[%s3779_s10 + $0x30] sm:$0xff]  }
 0x938   : > { %2759 = vmatpush3.bf16.msra.mxu1 %v3647_v7 }
 0x93a   : > { %1870 = vadd.xlane.f32.xlu0 %v1869_v8  ;;  %1873 = vadd.xlane.f32.xlu1 %v1872_v9  ;;  %v3652_v8 = vld [vmem:[%s3779_s10 + $0x68] sm:$0xff]  }
 0x93b   : > { %2752 = vmatprep.subr.bf16.mxu1 %v3652_v8  ;;  %v3659_v9 = vld [vmem:[%s3779_s10 + $0x28] sm:$0xff]  }
 0x93c   : > { %2760 = vmatpush3.bf16.msra.mxu1 %v3659_v9 }
 0x9b7   : > { %v1853_v10 = vpop.xlane.xlu0 %1852  ;;  %v1859_v11 = vpop.xlane.xlu1 %1858 }
 0x9b8   : > { %v1875_v12 = vmul.f32 0.015625, %v1853_v10  ;;  %v1877_v13 = vmul.f32 0.015625, %v1859_v11  ;;  %v3664_v10 = vld [vmem:[%s3779_s10 + $0x60] sm:$0xff]  }
 0x9b9   : > { %2753 = vmatprep.subr.bf16.mxu1 %v3664_v10  ;;  %v3671_v11 = vld [vmem:[%s3779_s10 + $0x20] sm:$0xff]  }
 0x9ba   : > { %v3558_v14 = vsub.f32 %v3524_v1, %v1875_v12  ;;  %v3561_v36 = vsub.f32 %v3526_v43, %v1877_v13  ;;  %v3676_v12 = vld [vmem:[%s3779_s10 + $0x58] sm:$0xff]   ;;  %2761 = vmatpush3.bf16.msra.mxu1 %v3671_v11 }
 0x9bb   : > { %v1856_v40 = vpop.xlane.xlu0 %1855  ;;  %v1862_v19 = vpop.xlane.xlu1 %1861  ;;  %2754 = vmatprep.subr.bf16.mxu1 %v3676_v12  ;;  %v3683_v13 = vld [vmem:[%s3779_s10 + $0x18] sm:$0xff]  }
 0x9bc   : > { %v1876_v42 = vmul.f32 0.015625, %v1856_v40  ;;  %v1878_v21 = vmul.f32 0.015625, %v1862_v19  ;;  %v1891_v25 = vmul.f32 %v3558_v14, %v3558_v14  ;;  %v1893_v56 = vmul.f32 %v3561_v36, %v3561_v36 }
 0x9be   : > { %v3568_v38 = vsub.f32 %v3528_v53, %v1876_v42  ;;  %v3571_v45 = vsub.f32 %v3535_v41, %v1878_v21  ;;  %v1899_v18 = vsel %vm428_vm0, %v1891_v25, 0.0  ;;  %v1905_v31 = vsel %vm428_vm0, %v1893_v56, 0.0  ;;  %2762 = vmatpush3.bf16.msra.mxu1 %v3683_v13 }
 0x9bf   : > { %1900 = vadd.xlane.f32.xlu0 %v1899_v18  ;;  %v1865_v32 = vpop.xlane.xlu0 %1864  ;;  %v1868_v47 = vpop.xlane.xlu1 %1867 }
 0x9c0   : > { %v1879_v55 = vmul.f32 0.015625, %v1865_v32  ;;  %v1880_v44 = vmul.f32 0.015625, %v1868_v47  ;;  %v1892_v58 = vmul.f32 %v3568_v38, %v3568_v38  ;;  %v1894_v60 = vmul.f32 %v3571_v45, %v3571_v45 }
 0x9c2   : > { %v3580_v46 = vsub.f32 %v3537_v23, %v1879_v55  ;;  %v3583_v61 = vsub.f32 %v3539_v35, %v1880_v44  ;;  %v1902_v28 = vsel %vm428_vm0, %v1892_v58, 0.0  ;;  %v1908_v39 = vsel %vm428_vm0, %v1894_v60, 0.0 }
 0x9c3   : > { %1906 = vadd.xlane.f32.xlu0 %v1905_v31  ;;  %1903 = vadd.xlane.f32.xlu1 %v1902_v28  ;;  %v1871_v52 = vpop.xlane.xlu0 %1870  ;;  %v1874_v0 = vpop.xlane.xlu1 %1873 }
 0x9c4   : > { %v1881_v48 = vmul.f32 0.015625, %v1871_v52  ;;  %v1882_v16 = vmul.f32 0.015625, %v1874_v0  ;;  %v1895_v15 = vmul.f32 %v3580_v46, %v3580_v46  ;;  %v1896_v50 = vmul.f32 %v3583_v61, %v3583_v61 }
 0x9c6   : > { %v3592_v57 = vsub.f32 %v3541_v3, %v1881_v48  ;;  %v3595_v51 = vsub.f32 %v3543_v49, %v1882_v16  ;;  %v1911_v17 = vsel %vm428_vm0, %v1895_v15, 0.0  ;;  %v1914_v24 = vsel %vm428_vm0, %v1896_v50, 0.0 }
 0x9c7   : > { %1909 = vadd.xlane.f32.xlu1 %v1908_v39  ;;  %1912 = vadd.xlane.f32.xlu0 %v1911_v17 }
 0x9c8   : > { %v1897_v26 = vmul.f32 %v3592_v57, %v3592_v57  ;;  %v1898_v54 = vmul.f32 %v3595_v51, %v3595_v51 }
 0x9ca   : > { %v1917_v27 = vsel %vm428_vm0, %v1897_v26, 0.0  ;;  %v1920_v30 = vsel %vm428_vm0, %v1898_v54, 0.0  ;;  %v2530_v26 = vld [vmem:[%s3775_s6] ss:$0 sm:$0xff] }
 0x9cb   : > { %1915 = vadd.xlane.f32.xlu1 %v1914_v24  ;;  %1918 = vadd.xlane.f32.xlu0 %v1917_v27 }
 0x9cf   : > { %1921 = vadd.xlane.f32.xlu1 %v1920_v30 }
 0xa48   : > { %v1901_v40 = vpop.xlane.xlu0 %1900 }
 0xa49   : > { %v1923_v19 = vmul.f32 0.015625, %v1901_v40 }
 0xa4b   : > { %v1931_v42 = vadd.f32 1e-05, %v1923_v19 }
 0xa4c   : > { %v1904_v21 = vpop.xlane.xlu1 %1903  ;;  %v1907_v25 = vpop.xlane.xlu0 %1906 }
 0xa4d   : > { %2936 = vrsqrt.f32 %v1931_v42  ;;  %v1924_v56 = vmul.f32 0.015625, %v1904_v21  ;;  %v1925_v18 = vmul.f32 0.015625, %v1907_v25 }
 0xa4f   : > { %v1932_v32 = vadd.f32 1e-05, %v1924_v56  ;;  %v1933_v47 = vadd.f32 1e-05, %v1925_v18 }
 0xa50   : > { %v1910_v31 = vpop.xlane.xlu1 %1909  ;;  %v1913_v55 = vpop.xlane.xlu0 %1912 }
 0xa51   : > { %2938 = vrsqrt.f32 %v1932_v32  ;;  %v1926_v44 = vmul.f32 0.015625, %v1910_v31  ;;  %v1927_v60 = vmul.f32 0.015625, %v1913_v55 }
 0xa52   : > { %2940 = vrsqrt.f32 %v1933_v47 }
 0xa53   : > { %v1934_v58 = vadd.f32 1e-05, %v1926_v44  ;;  %v1935_v0 = vadd.f32 1e-05, %v1927_v60  ;;  %v2003_v60 = vsub.s32 1, %v3161_v2 }
 0xa54   : > { %v1916_v28 = vpop.xlane.xlu1 %1915  ;;  %v1919_v48 = vpop.xlane.xlu0 %1918 }
 0xa55   : > { %2942 = vrsqrt.f32 %v1934_v58  ;;  %v1928_v52 = vmul.f32 0.015625, %v1916_v28  ;;  %v1929_v17 = vmul.f32 0.015625, %v1919_v48  ;;  %v1999_v28 = vsub.s32 0, %v3161_v2 }
 0xa57   : > { %v1936_v39 = vadd.f32 1e-05, %v1928_v52  ;;  %v1937_v30 = vadd.f32 1e-05, %v1929_v17  ;;  %v1995_v52 = vld [vmem:[%s3778_s9] sm:$0x3] }
 0xa58   : > { %v1922_v16 = vpop.xlane.xlu1 %1921  ;;  %v2000_v48 = vrot.slane %v1995_v52, %v1999_v28 }
 0xa59   : > { %2944 = vrsqrt.f32 %v1936_v39  ;;  %v1930_v15 = vmul.f32 0.015625, %v1922_v16  ;;  %v2004_v39 = vrot.slane %v1995_v52, %v2003_v60 }
 0xa5a   : > { %v2937_v50 = vpop.eup %2936  ;;  %2946 = vrsqrt.f32 %v1935_v0 }
 0xa5b   : > { %v1947_v24 = vmul.f32 %v2937_v50, %v3558_v14  ;;  %v1938_v54 = vadd.f32 1e-05, %v1930_v15 }
 0xa5d   : > { %v1961_v37 = vmul.f32 %v2530_v26, %v1947_v24  ;;  %2948 = vrsqrt.f32 %v1938_v54 }
 0xa5e   : > { %v2939_v27 = vpop.eup %2938  ;;  %2950 = vrsqrt.f32 %v1937_v30 }
 0xa5f   : > { %v1948_v33 = vmul.f32 %v2939_v27, %v3568_v38  ;;  %v2941_v59 = vpop.eup %2940  ;;  %v1975_v14 = vadd.f32 %v2531_v20, %v1961_v37 }
 0xa60   : > { %v1949_v62 = vmul.f32 %v2941_v59, %v3561_v36 }
 0xa61   : > { %v1962_v22 = vmul.f32 %v2530_v26, %v1948_v33 }
 0xa62   : > { %v2943_v29 = vpop.eup %2942  ;;  %v1963_v38 = vmul.f32 %v2530_v26, %v1949_v62 }
 0xa63   : > { %v1976_v34 = vadd.f32 %v2531_v20, %v1962_v22  ;;  %v1950_v4 = vmul.f32 %v2943_v29, %v3571_v45 }
 0xa64   : > { %v1977_v18 = vadd.f32 %v2531_v20, %v1963_v38 }
 0xa65   : > { %v1983_v40 = vpack.c.bf16 %v1976_v34, %v1975_v14  ;;  %v1964_v19 = vmul.f32 %v2530_v26, %v1950_v4 }
 0xa66   : > { %v2945_v42 = vpop.eup %2944 }
 0xa67   : > { %2540 = vmatmul.mubr.msk.bf16.vlgmr.msra.gmra.mxu0 %vm428_vm0, %v1983_v40  ;;  %v2947_v21 = vpop.eup %2946  ;;  %v1978_v25 = vadd.f32 %v2531_v20, %v1964_v19  ;;  %v1952_v56 = vmul.f32 %v2945_v42, %v3583_v61 }
 0xa68   : > { %2101 = vmatprep.mubr.bf16.mxu0 %v2968_v63  ;;  %2627 = vmatpush3.bf16.msra.mxu0 %v3635_v5  ;;  %v1951_v36 = vmul.f32 %v2947_v21, %v3580_v46 }
 0xa69   : > { %2628 = vmatprep.subr.bf16.mxu0 %v3640_v6  ;;  %v1984_v45 = vpack.c.bf16 %v1978_v25, %v1977_v18  ;;  %v1966_v32 = vmul.f32 %v2530_v26, %v1952_v56 }
 0xa6a   : > { %v2949_v47 = vpop.eup %2948  ;;  %v1965_v55 = vmul.f32 %v2530_v26, %v1951_v36 }
 0xa6b   : > { %v2951_v31 = vpop.eup %2950  ;;  %v1980_v61 = vadd.f32 %v2531_v20, %v1966_v32  ;;  %v1954_v5 = vmul.f32 %v2949_v47, %v3595_v51 }
 0xa6c   : > { %2629 = vmatpush3.bf16.msra.mxu0 %v3647_v7  ;;  %v1979_v46 = vadd.f32 %v2531_v20, %v1965_v55  ;;  %v1953_v6 = vmul.f32 %v2951_v31, %v3592_v57  ;;  %v2930_v57 = vld [vmem:[%s3779_s10 + $0x50] sm:$0xff]  }
 0xa6d   : > { %2630 = vmatprep.subr.bf16.mxu0 %v3652_v8  ;;  %v1968_v8 = vmul.f32 %v2530_v26, %v1954_v5  ;;  %2755 = vmatprep.subr.bf16.mxu1 %v2930_v57 }
 0xa6e   : > { %v1985_v7 = vpack.c.bf16 %v1980_v61, %v1979_v46  ;;  %v1967_v44 = vmul.f32 %v2530_v26, %v1953_v6 }
 0xa6f   : > { %2541 = vmatmul.mubr.msk.bf16.gmra.mxu0 %vm428_vm0, %v1984_v45 }
 0xa70   : > { %2111 = vmatprep.mubr.bf16.mxu0 %v2968_v63  ;;  %2631 = vmatpush3.bf16.msra.mxu0 %v3659_v9  ;;  %v1982_v9 = vadd.f32 %v2531_v20, %v1968_v8  ;;  %v1981_v51 = vadd.f32 %v2531_v20, %v1967_v44 }
 0xa71   : > { %2632 = vmatprep.subr.bf16.mxu0 %v3664_v10  ;;  %v2931_v10 = vld [vmem:[%s3779_s10 + $0x10] sm:$0xff]  }
 0xa72   : > { %v1986_v58 = vpack.c.bf16 %v1982_v9, %v1981_v51  ;;  %2763 = vmatpush3.bf16.msra.mxu1 %v2931_v10 }
 0xa74   : > { %2633 = vmatpush3.bf16.msra.mxu0 %v3671_v11  ;;  %v2933_v11 = vld [vmem:[%s3779_s10 + $0x8] sm:$0xff]  }
 0xa75   : > { %2634 = vmatprep.subr.bf16.mxu0 %v3676_v12  ;;  %v2934_v12 = vld [vmem:[%s3779_s10 + $0x40] sm:$0xff]  }
 0xa77   : > { %2542 = vmatmul.mubr.msk.bf16.gmra.mxu0 %vm428_vm0, %v1985_v7 }
 0xa78   : > { %2121 = vmatprep.mubr.bf16.mxu0 %v2968_v63  ;;  %2635 = vmatpush3.bf16.msra.mxu0 %v3683_v13  ;;  %v2932_v63 = vld [vmem:[%s3779_s10 + $0x48] sm:$0xff]   ;;  %v2935_v13 = vld [vmem:[%s3779_s10] sm:$0xff]  }
 0xa79   : > { %2636 = vmatprep.subr.bf16.mxu0 %v2930_v57  ;;  %2756 = vmatprep.subr.bf16.mxu1 %v2932_v63 }
 0xa7a   : > { %2764 = vmatpush3.bf16.msra.mxu1 %v2933_v11 }
 0xa7b   : > { %2757 = vmatprep.subr.bf16.mxu1 %v2934_v12 }
 0xa7c   : > { %2637 = vmatpush3.bf16.msra.mxu0 %v2931_v10 }
 0xa7d   : > { %2638 = vmatprep.subr.bf16.mxu0 %v2932_v63 }
 0xa7e   : > { %2765 = vmatpush3.bf16.msra.mxu1 %v2935_v13 }
 0xa7f   : > { %2543 = vmatmul.mubr.msk.bf16.gmra.mxu0 %vm428_vm0, %v1986_v58 }
 0xa80   : > { %2639 = vmatpush3.bf16.msra.mxu0 %v2933_v11 }
 0xa81   : > { %2640 = vmatprep.subr.bf16.mxu0 %v2934_v12 }
 0xa84   : > { %2641 = vmatpush3.bf16.msra.mxu0 %v2935_v13 }
 0xb27   : > { %v2093_v0 = vpop.f32.mrf.mxu0 }
 0xb28   : > { %v2094_v24 = vadd.f32 %v2093_v0, %v2000_v48 }
 0xb29   : > { %v2095_v16 = vpop.f32.mrf.mxu0 }
 0xb2a   : > { %v2096_v50 = vadd.f32 %v2095_v16, %v2004_v39  ;;  %v2132_v59 = vmax.f32 %v2094_v24, 0.0 }
 0xb2b   : > { %v2097_v15 = vpop.f32.mrf.mxu0 }
 0xb2c   : > { %v2098_v17 = vadd.f32 %v2097_v15, %v2000_v48  ;;  %v2133_v33 = vmax.f32 %v2096_v50, 0.0  ;;  %v2544_v50 = vld [vmem:[%s3780_s11] ss:$0 sm:$0xff] }
 0xb2d   : > { %v2099_v26 = vpop.f32.mrf.mxu0 }
 0xb2e   : > { %v2100_v54 = vadd.f32 %v2099_v26, %v2004_v39  ;;  %v2134_v27 = vmax.f32 %v2098_v17, 0.0 }
 0xb2f   : > { %v2103_v30 = vpop.f32.mrf.mxu0 }
 0xb30   : > { %v2135_v37 = vmax.f32 %v2100_v54, 0.0  ;;  %v2148_v22 = vpack.c.bf16 %v2134_v27, %v2132_v59  ;;  %v2104_v62 = vadd.f32 %v2103_v30, %v2000_v48 }
 0xb31   : > { %v2105_v2 = vpop.f32.mrf.mxu0 }
 0xb32   : > { %v2149_v20 = vpack.c.bf16 %v2135_v37, %v2133_v33  ;;  %v2106_v14 = vadd.f32 %v2105_v2, %v2004_v39  ;;  %v2136_v25 = vmax.f32 %v2104_v62, 0.0 }
 0xb33   : > { %v2107_v29 = vpop.f32.mrf.mxu0 }
 0xb34   : > { %v2108_v34 = vadd.f32 %v2107_v29, %v2000_v48  ;;  %2323 = vmatprep.mubr.bf16.mxu0 %v2149_v20  ;;  %v2137_v38 = vmax.f32 %v2106_v14, 0.0 }
 0xb35   : > { %v2109_v4 = vpop.f32.mrf.mxu0  ;;  %2324 = vmatmul.mubr.bf16.vlgmr.msra.gmra.mxu0 %v2148_v22 }
 0xb36   : > { %v2110_v40 = vadd.f32 %v2109_v4, %v2004_v39  ;;  %v2138_v19 = vmax.f32 %v2108_v34, 0.0 }
 0xb37   : > { %v2113_v42 = vpop.f32.mrf.mxu0 }
 0xb38   : > { %v2139_v21 = vmax.f32 %v2110_v40, 0.0  ;;  %v2150_v36 = vpack.c.bf16 %v2138_v19, %v2136_v25  ;;  %v2114_v31 = vadd.f32 %v2113_v42, %v2000_v48 }
 0xb39   : > { %v2115_v56 = vpop.f32.mrf.mxu0 }
 0xb3a   : > { %v2151_v18 = vpack.c.bf16 %v2139_v21, %v2137_v38  ;;  %v2116_v32 = vadd.f32 %v2115_v56, %v2004_v39  ;;  %v2140_v8 = vmax.f32 %v2114_v31, 0.0 }
 0xb3b   : > { %v2117_v45 = vpop.f32.mrf.mxu0 }
 0xb3c   : > { %v2118_v47 = vadd.f32 %v2117_v45, %v2000_v48  ;;  %2331 = vmatprep.mubr.bf16.mxu1 %v2151_v18  ;;  %v2141_v6 = vmax.f32 %v2116_v32, 0.0 }
 0xb3d   : > { %v2119_v55 = vpop.f32.mrf.mxu0  ;;  %2332 = vmatmul.mubr.bf16.vlgmr.msra.gmra.mxu1 %v2150_v36 }
 0xb3e   : > { %v2120_v61 = vadd.f32 %v2119_v55, %v2004_v39  ;;  %v2142_v5 = vmax.f32 %v2118_v47, 0.0 }
 0xb3f   : > { %v2123_v46 = vpop.f32.mrf.mxu0 }
 0xb40   : > { %v2143_v7 = vmax.f32 %v2120_v61, 0.0  ;;  %v2152_v51 = vpack.c.bf16 %v2142_v5, %v2140_v8  ;;  %v2124_v63 = vadd.f32 %v2123_v46, %v2000_v48 }
 0xb41   : > { %v2125_v44 = vpop.f32.mrf.mxu0 }
 0xb42   : > { %v2153_v9 = vpack.c.bf16 %v2143_v7, %v2141_v6  ;;  %v2126_v57 = vadd.f32 %v2125_v44, %v2004_v39  ;;  %v2144_v52 = vmax.f32 %v2124_v63, 0.0 }
 0xb43   : > { %v2127_v58 = vpop.f32.mrf.mxu0 }
 0xb44   : > { %v2128_v10 = vadd.f32 %v2127_v58, %v2000_v48  ;;  %2339 = vmatprep.mubr.bf16.mxu1 %v2153_v9  ;;  %v2145_v60 = vmax.f32 %v2126_v57, 0.0 }
 0xb45   : > { %v2129_v11 = vpop.f32.mrf.mxu0  ;;  %2340 = vmatmul.mubr.bf16.gmra.mxu1 %v2152_v51 }
 0xb46   : > { %v2130_v12 = vadd.f32 %v2129_v11, %v2004_v39  ;;  %v2146_v13 = vmax.f32 %v2128_v10, 0.0 }
 0xb48   : > { %v2147_v28 = vmax.f32 %v2130_v12, 0.0  ;;  %v2154_v16 = vpack.c.bf16 %v2146_v13, %v2144_v52 }
 0xb4a   : > { %v2155_v0 = vpack.c.bf16 %v2147_v28, %v2145_v60 }
 0xb4c   : > { %2347 = vmatprep.mubr.bf16.mxu1 %v2155_v0 }
 0xb4d   : > { %2348 = vmatmul.mubr.bf16.gmra.mxu1 %v2154_v16 }
 0xbf5   : > { %v2642_v15 = vpop.f32.mrf.mxu0 }
 0xbf7   : > { %v2643_v17 = vpop.f32.mrf.mxu0 }
 0xbf8   : > { %v2644_v48 = vadd.f32 %v2643_v17, %v2642_v15 }
 0xbf9   : > { %v2645_v24 = vpop.f32.mrf.mxu0 }
 0xbfa   : > { %v2326_v26 = vadd.f32 %v2644_v48, %v2544_v50 }
 0xbfb   : > { %v2646_v39 = vpop.f32.mrf.mxu0 }
 0xbfc   : > { %v2356_v54 = vadd.f32 %v2326_v26, %v3524_v1  ;;  %v2647_v27 = vadd.f32 %v2646_v39, %v2645_v24 }
 0xbfd   : > { %v2648_v30 = vpop.f32.mrf.mxu1 }
 0xbfe   : > { %2364 = vst.msk [vmem:[%s3057_s30] sm:$0xff] %vm428_vm0, %v2356_v54  ;;  %v2329_v33 = vadd.f32 %v2647_v27, %v2544_v50 }
 0xbff   : > { %v2649_v37 = vpop.f32.mrf.mxu1 }
 0xc00   : > { %v2357_v59 = vadd.f32 %v2329_v33, %v3528_v53  ;;  %v2650_v2 = vadd.f32 %v2649_v37, %v2648_v30 }
 0xc01   : > { %v2651_v20 = vpop.f32.mrf.mxu1 }
 0xc02   : > { %2365 = vst.msk [vmem:[%s3057_s30 + $0x8] sm:$0xff] %vm428_vm0, %v2357_v59  ;;  %v2334_v22 = vadd.f32 %v2650_v2, %v2544_v50 }
 0xc03   : > { %v2652_v29 = vpop.f32.mrf.mxu1 }
 0xc04   : > { %v2358_v14 = vadd.f32 %v2334_v22, %v3526_v43  ;;  %v2653_v34 = vadd.f32 %v2652_v29, %v2651_v20 }
 0xc05   : > { %v2654_v1 = vpop.f32.mrf.mxu1 }
 0xc06   : > { %2366 = vst.msk [vmem:[%s3057_s30 + $0x10] sm:$0xff] %vm428_vm0, %v2358_v14  ;;  %v2337_v62 = vadd.f32 %v2653_v34, %v2544_v50 }
 0xc07   : > { %v2655_v4 = vpop.f32.mrf.mxu1 }
 0xc08   : > { %v2359_v40 = vadd.f32 %v2337_v62, %v3535_v41  ;;  %v2656_v19 = vadd.f32 %v2655_v4, %v2654_v1 }
 0xc09   : > { %v2657_v53 = vpop.f32.mrf.mxu1 }
 0xc0a   : > { %2367 = vst.msk [vmem:[%s3057_s30 + $0x18] sm:$0xff] %vm428_vm0, %v2359_v40  ;;  %v2342_v42 = vadd.f32 %v2656_v19, %v2544_v50 }
 0xc0b   : > { %v2658_v38 = vpop.f32.mrf.mxu1 }
 0xc0c   : > { %v2360_v21 = vadd.f32 %v2342_v42, %v3537_v23  ;;  %v2659_v25 = vadd.f32 %v2658_v38, %v2657_v53 }
 0xc0d   : > { %v2660_v43 = vpop.f32.mrf.mxu1 }
 0xc0e   : > { %2368 = vst.msk [vmem:[%s3057_s30 + $0x20] sm:$0xff] %vm428_vm0, %v2360_v21  ;;  %v2345_v56 = vadd.f32 %v2659_v25, %v2544_v50 }
 0xc0f   : > { %v2661_v18 = vpop.f32.mrf.mxu1 }
 0xc10   : > { %v2361_v36 = vadd.f32 %v2345_v56, %v3539_v35  ;;  %v2662_v45 = vadd.f32 %v2661_v18, %v2660_v43 }
 0xc11   : > { %v2663_v41 = vpop.f32.mrf.mxu1 }
 0xc12   : > { %2369 = vst.msk [vmem:[%s3057_s30 + $0x28] sm:$0xff] %vm428_vm0, %v2361_v36  ;;  %v2350_v32 = vadd.f32 %v2662_v45, %v2544_v50 }
 0xc13   : > { %v2664_v47 = vpop.f32.mrf.mxu1 }
 0xc14   : > { %v2362_v31 = vadd.f32 %v2350_v32, %v3541_v3  ;;  %v2665_v55 = vadd.f32 %v2664_v47, %v2663_v41 }
 0xc16   : > { %2370 = vst.msk [vmem:[%s3057_s30 + $0x30] sm:$0xff] %vm428_vm0, %v2362_v31  ;;  %v2353_v23 = vadd.f32 %v2665_v55, %v2544_v50 }
 0xc18   : > { %v2363_v61 = vadd.f32 %v2353_v23, %v3543_v49 }
 0xc1a   : > { %2371 = vst.msk [vmem:[%s3057_s30 + $0x38] sm:$0xff] %vm428_vm0, %v2363_v61 }
 0xc1b PF: > { %s22_s21 = sadd.s32 1, %s2962_s21  }
 0xc1c   : > { %p19_p5 = scmp.ge.s32.totalorder %s22_s21, 4  }
 0xc1e   :  { %21 = sbr.rel (!%p19_p5) target bundleno = 1 (0x1), region = 119 }

</bundles_post_ra>
